<compile_context>
chip_gen: v6e
topology: v6e:2x2x1
jax: 0.10.0
libtpu: 0.0.40
codegen_flags: <defaults>
</compile_context>

<pallas_src>
import functools

import jax
import jax.numpy as jnp
from jax.experimental import pallas as pl
from jax.experimental.pallas import tpu as pltpu


# ---------------------------------------------------------------------------
# In-kernel activation helpers (EUP exp + approx reciprocal, no VPU divide)
# ---------------------------------------------------------------------------

def _sigmoid(v):
    return pl.reciprocal(1.0 + jnp.exp(-v), approx=True)


def _silu(v):
    return v * _sigmoid(v)


# ---------------------------------------------------------------------------
# Fused MBConv kernel: NB images per grid step, lane-dense (NB*H, W*C) slabs
# ---------------------------------------------------------------------------

def _mbconv_kernel(x_ref,              # (NB, H, W*Cin)  folded NHWC input (residual too)
                   wexp_ref,           # (W*Cin, W*Cexp) block-diag expand weight (bf16, BN scale folded)
                   bexp_ref,           # (1, W*Cexp)     folded BN bias
                   wdw_ref,            # (K*K, W*Cexp)   depthwise taps (BN scale folded)
                   bdw_ref,            # (1, W*Cexp)
                   w1_ref,             # (Csq, W*Cexp)   SE fc1 weight^T (tiled over W)
                   b1_ref,             # (1, Csq)
                   w2_ref,             # (Csq, W*Cexp)   SE fc2 weight (tiled over W)
                   b2_ref,             # (1, W*Cexp)
                   wproj_ref,          # (W*Cexp, W*Cout) block-diag projection weight (bf16)
                   bproj_ref,          # (1, W*Cout)
                   o_ref,              # (NB, H, W*Cout)
                   *, NB, H, W, Cexp, K, inv_hw):
    f32 = jnp.float32
    HB = NB * H
    C = Cexp
    WC = W * C
    WCin = x_ref.shape[2]

    x = x_ref[...].reshape(HB, WCin).astype(f32)                  # (HB, W*Cin)

    # --- 1) expansion 1x1 conv (bf16 MXU, f32 acc) + folded-BN bias + SiLU ---
    y = jnp.dot(x.astype(wexp_ref.dtype), wexp_ref[...],
                preferred_element_type=f32)                       # (HB, WC)
    y = _silu(y + bexp_ref[...])

    # --- 2) depthwise KxK conv, stride 1, 'same' zero-pad, via XLU rolls -----
    # TODO(synk): v6e/v7x could run this elementwise section in bf16 (f32 acc);
    #             kept f32 so the sublane roll stays on the safe 32-bit path.
    R = K // 2
    wd = wdw_ref[...]                                             # (K*K, WC)
    lane = jax.lax.broadcasted_iota(jnp.int32, (HB, WC), 1)
    rowi = jax.lax.broadcasted_iota(jnp.int32, (NB, H, WC), 1).reshape(HB, WC)
    # Precomputed edge masks (reused across taps). rowi is the row-within-image
    # index, so masking also kills the rows that a sublane roll pulled across
    # an image boundary when NB > 1.
    lane_ok = {dw: (lane < (W - dw) * C) if dw > 0 else (lane >= (-dw) * C)
               for dw in range(-R, R + 1) if dw != 0}
    row_ok = {dh: (rowi < H - dh) if dh > 0 else (rowi >= -dh)
              for dh in range(-R, R + 1) if dh != 0}

    acc = y * wd[R * K + R]                                       # center tap
    for dw in range(-R, R + 1):
        if dw == 0:
            yl = y
        else:
            yl = pltpu.roll(y, shift=(-dw * C) % WC, axis=1)      # lane roll by C
            yl = jnp.where(lane_ok[dw], yl, 0.0)
        for dh in range(-R, R + 1):
            if dh == 0 and dw == 0:
                continue                                          # already in acc
            if dh == 0:
                yt = yl
            else:
                yt = pltpu.roll(yl, shift=(-dh) % HB, axis=0)     # sublane roll
                yt = jnp.where(row_ok[dh], yt, 0.0)
            acc = acc + yt * wd[(dh + R) * K + (dw + R)]
    h = _silu(acc + bdw_ref[...])                                 # (HB, WC)

    # --- 3) squeeze-excitation (per-image pooled mean + two tiny FCs) --------
    h3 = h.reshape(NB, H, WC)
    colsum = jnp.sum(h3, axis=1)                                  # (NB, WC)
    s1 = jnp.sum(colsum[:, None, :] * w1_ref[...][None, :, :], axis=2) * inv_hw
    s1 = _silu(s1 + b1_ref[...])                                  # (NB, Csq)
    s2 = jnp.sum(s1[:, :, None] * w2_ref[...][None, :, :], axis=1) + b2_ref[...]
    se = _sigmoid(s2)                                             # (NB, WC)
    h3 = h3 * se[:, None, :]

    # --- 4) projection 1x1 conv (bf16 MXU) + folded-BN bias + residual -------
    hp = h3.reshape(HB, WC).astype(wproj_ref.dtype)
    out = jnp.dot(hp, wproj_ref[...], preferred_element_type=f32) # (HB, W*Cout)
    out = out + bproj_ref[...] + x                                # Cin == Cout residual
    o_ref[...] = out.reshape(o_ref.shape).astype(o_ref.dtype)


# ---------------------------------------------------------------------------
# One-time parameter folding (hoisted out of the forward path)
# ---------------------------------------------------------------------------

def fold_params(p, W, *, K=3, mxu_dtype=jnp.bfloat16):
    """Fold BN scales into conv weights, build block-diagonal 1x1 weights and
    W-tiled per-channel params.  Call ONCE per module; reuse across forwards.

    NOTE (v7x scaling): the kron block-diagonal weights are O(W^2 * C_in * C_exp).
    For real EfficientNet spatial sizes tile the W axis instead of building them
    whole (v7x has only 64 MiB VMEM per TensorCore)."""
    f32 = jnp.float32
    Cin, Cexp = p["w_exp"].shape
    Cout = p["w_proj"].shape[1]
    Csq = p["w_se1"].shape[1]
    eye_w = jnp.eye(W, dtype=f32)

    def tile_w(a):  # tile per-channel params across W: [.., w*C + c] = a[.., c]
        return jnp.tile(a.astype(f32), (1, W))

    # Bake BN scales into the convolution weights (biases stay separate).
    w_exp = p["w_exp"].astype(f32) * p["scale_exp"].reshape(1, Cexp)
    w_dw = p["w_dw"].astype(f32) * p["scale_dw"].reshape(1, Cexp)
    w_proj = p["w_proj"].astype(f32) * p["scale_proj"].reshape(1, Cout)

    return {
        "W": W, "K": K, "Cin": Cin, "Cexp": Cexp, "Cout": Cout, "Csq": Csq,
        "w_exp_bd": jnp.kron(eye_w, w_exp).astype(mxu_dtype),    # (W*Cin, W*Cexp)
        "b_exp": tile_w(p["bias_exp"]),
        "w_dw": jnp.tile(w_dw, (1, W)),                          # (K*K, W*Cexp)
        "b_dw": tile_w(p["bias_dw"]),
        "w_se1": jnp.tile(p["w_se1"].astype(f32).T, (1, W)),     # (Csq, W*Cexp)
        "b_se1": p["b_se1"].astype(f32).reshape(1, Csq),
        "w_se2": jnp.tile(p["w_se2"].astype(f32), (1, W)),       # (Csq, W*Cexp)
        "b_se2": tile_w(p["b_se2"]),
        "w_proj_bd": jnp.kron(eye_w, w_proj).astype(mxu_dtype),  # (W*Cexp, W*Cout)
        "b_proj": tile_w(p["bias_proj"]),
    }


# ---------------------------------------------------------------------------
# Forward on the folded (N, H, W*C) layout (preferred production entry point)
# ---------------------------------------------------------------------------

def mbconv_apply(x_fold, fp, *, images_per_step=None):
    # TODO(synk): stride=2 depthwise and the expand_ratio=1 (no expansion /
    #             no residual) MBConv variants are not implemented.
    N, H, WCin = x_fold.shape
    W, K = fp["W"], fp["K"]
    Cin, Cexp, Cout = fp["Cin"], fp["Cexp"], fp["Cout"]
    assert WCin == W * Cin
    assert Cin == Cout, "residual path requires Cin == Cout"

    if images_per_step is None:
        # Two grid steps: both v7x TensorCores get work; on single-core
        # v5e/v6e it is still only 2 steps of per-step overhead for any N.
        images_per_step = N // 2 if (N >= 2 and N % 2 == 0) else 1
    NB = images_per_step
    assert N % NB == 0
    steps = N // NB
    WC_e, WC_o = W * Cexp, W * Cout

    kernel = functools.partial(_mbconv_kernel, NB=NB, H=H, W=W, Cexp=Cexp,
                               K=K, inv_hw=1.0 / float(H * W))

    const2 = lambda n: (0, 0)
    # TODO(synk): mark the constant weight inputs single-buffered
    #             (pipeline_mode=pl.Buffered(1)) once confirmed supported.
    weight_keys = ("w_exp_bd", "b_exp", "w_dw", "b_dw", "w_se1", "b_se1",
                   "w_se2", "b_se2", "w_proj_bd", "b_proj")
    weight_specs = [pl.BlockSpec(fp[k].shape, const2) for k in weight_keys]

    out = pl.pallas_call(
        kernel,
        out_shape=jax.ShapeDtypeStruct((N, H, WC_o), x_fold.dtype),
        grid=(steps,),
        in_specs=[pl.BlockSpec((NB, H, WCin), lambda n: (n, 0, 0))] + weight_specs,
        out_specs=pl.BlockSpec((NB, H, WC_o), lambda n: (n, 0, 0)),
        compiler_params=pltpu.CompilerParams(
            dimension_semantics=("parallel",)),
    )(x_fold, *(fp[k] for k in weight_keys))
    return out


# ---------------------------------------------------------------------------
# NCHW compatibility wrapper (matches the PyTorch module's interface)
# ---------------------------------------------------------------------------

def mbconv_forward(x_nchw, fp, **kw):
    N, Cin, H, W = x_nchw.shape
    x_fold = jnp.transpose(x_nchw, (0, 2, 3, 1)).reshape(N, H, W * Cin)
    out = mbconv_apply(x_fold, fp, **kw)
    return jnp.transpose(out.reshape(N, H, W, -1), (0, 3, 1, 2))


# ---------------------------------------------------------------------------
# Pure-JAX reference (sanity check only)
# ---------------------------------------------------------------------------

def mbconv_reference(x_nchw, p, *, K=3):
    silu = lambda v: v * jax.nn.sigmoid(v)
    dn = ("NHWC", "HWIO", "NHWC")
    x = jnp.transpose(x_nchw, (0, 2, 3, 1)).astype(jnp.float32)

    h = jax.lax.conv_general_dilated(x, p["w_exp"][None, None], (1, 1), "VALID",
                                     dimension_numbers=dn)
    h = silu(h * p["scale_exp"] + p["bias_exp"])

    cexp = h.shape[-1]
    wd = p["w_dw"].reshape(K, K, 1, cexp)
    pad = K // 2
    h = jax.lax.conv_general_dilated(h, wd, (1, 1), ((pad, pad), (pad, pad)),
                                     dimension_numbers=dn, feature_group_count=cexp)
    h = silu(h * p["scale_dw"] + p["bias_dw"])

    pooled = jnp.mean(h, axis=(1, 2))
    s = silu(pooled @ p["w_se1"] + p["b_se1"])
    s = jax.nn.sigmoid(s @ p["w_se2"] + p["b_se2"])
    h = h * s[:, None, None, :]

    y = jax.lax.conv_general_dilated(h, p["w_proj"][None, None], (1, 1), "VALID",
                                     dimension_numbers=dn)
    y = y * p["scale_proj"] + p["bias_proj"]
    y = y + x                       # StochasticDepth is identity in eval mode
    return jnp.transpose(y, (0, 3, 1, 2))


# ---------------------------------------------------------------------------
# Deterministic parameter construction (BN folded to scale/bias, eval mode)
# ---------------------------------------------------------------------------

def _bn_fold(kg, kb, km, kv, c, eps=1e-3):
    gamma = 1.0 + 0.1 * jax.random.normal(kg, (c,), jnp.float32)
    beta = 0.1 * jax.random.normal(kb, (c,), jnp.float32)
    mean = 0.1 * jax.random.normal(km, (c,), jnp.float32)
    var = jax.random.uniform(kv, (c,), jnp.float32, minval=0.5, maxval=1.5)
    scale = gamma / jnp.sqrt(var + eps)
    bias = beta - mean * scale
    return scale.reshape(1, c), bias.reshape(1, c)


def make_params(key, Cin=8, Cexp=32, Cout=8, Csq=2, K=3):
    ks = jax.random.split(key, 20)
    scale_exp, bias_exp = _bn_fold(ks[0], ks[1], ks[2], ks[3], Cexp)
    scale_dw, bias_dw = _bn_fold(ks[4], ks[5], ks[6], ks[7], Cexp)
    scale_pr, bias_pr = _bn_fold(ks[8], ks[9], ks[10], ks[11], Cout)
    return {
        "w_exp":  0.3 * jax.random.normal(ks[12], (Cin, Cexp), jnp.float32),
        "scale_exp": scale_exp, "bias_exp": bias_exp,
        "w_dw":   0.3 * jax.random.normal(ks[13], (K * K, Cexp), jnp.float32),
        "scale_dw": scale_dw, "bias_dw": bias_dw,
        "w_se1":  0.3 * jax.random.normal(ks[14], (Cexp, Csq), jnp.float32),
        "b_se1":  0.1 * jax.random.normal(ks[15], (1, Csq), jnp.float32),
        "w_se2":  0.3 * jax.random.normal(ks[16], (Csq, Cexp), jnp.float32),
        "b_se2":  0.1 * jax.random.normal(ks[17], (1, Cexp), jnp.float32),
        "w_proj": 0.3 * jax.random.normal(ks[18], (Cexp, Cout), jnp.float32),
        "scale_proj": scale_pr, "bias_proj": bias_pr,
    }


if __name__ == "__main__":
    key = jax.random.PRNGKey(0)
    kx, kp = jax.random.split(key)

    # MBConvConfig(expand_ratio=4, kernel=3, stride=1, in=8, out=8) -> residual
    N, Cin, H, W = 2, 8, 16, 16
    x = jax.random.normal(kx, (N, Cin, H, W), jnp.float32)      # NCHW like PyTorch
    params = make_params(kp)

    folded = fold_params(params, W, K=3)                        # one-time fold
    out = mbconv_forward(x, folded)
    out = jax.block_until_ready(out)

    ref = mbconv_reference(x, params, K=3)
    assert out.shape == (N, Cin, H, W), out.shape
    err = float(jnp.max(jnp.abs(out.astype(jnp.float32) - ref)))
    # bf16 MXU operands + approx-reciprocal SiLU => relaxed tolerance vs f32 ref
    assert err < 5e-2, f"max abs err {err}"
    print("KERNEL_OK")
</pallas_src>

<mosaic_0001>
module attributes {stable_mosaic.version = 11 : i64} {
  func.func @_mbconv_kernel(%arg0: i32, %arg1: memref<1x16x128xf32, #tpu.memory_space<vmem>>, %arg2: memref<128x512xbf16, #tpu.memory_space<vmem>>, %arg3: memref<1x512xf32, #tpu.memory_space<vmem>>, %arg4: memref<9x512xf32, #tpu.memory_space<vmem>>, %arg5: memref<1x512xf32, #tpu.memory_space<vmem>>, %arg6: memref<2x512xf32, #tpu.memory_space<vmem>>, %arg7: memref<1x2xf32, #tpu.memory_space<vmem>>, %arg8: memref<2x512xf32, #tpu.memory_space<vmem>>, %arg9: memref<1x512xf32, #tpu.memory_space<vmem>>, %arg10: memref<512x128xbf16, #tpu.memory_space<vmem>>, %arg11: memref<1x128xf32, #tpu.memory_space<vmem>>, %arg12: memref<1x16x128xf32, #tpu.memory_space<vmem>>) attributes {dimension_semantics = [#tpu.dimension_semantics<parallel>], iteration_bounds = array<i64: 2>, scalar_prefetch = 0 : i64, scratch_operands = 0 : i64, tpu.core_type = #tpu.core_type<tc>, window_params = [{transform_indices = @transform_0, window_bounds = array<i64: 1, 16, 128>}, {pipeline_mode = #tpu.pipeline_mode<synchronous>, transform_indices = @transform_1, window_bounds = array<i64: 128, 512>}, {pipeline_mode = #tpu.pipeline_mode<synchronous>, transform_indices = @transform_2, window_bounds = array<i64: 1, 512>}, {pipeline_mode = #tpu.pipeline_mode<synchronous>, transform_indices = @transform_3, window_bounds = array<i64: 9, 512>}, {pipeline_mode = #tpu.pipeline_mode<synchronous>, transform_indices = @transform_4, window_bounds = array<i64: 1, 512>}, {pipeline_mode = #tpu.pipeline_mode<synchronous>, transform_indices = @transform_5, window_bounds = array<i64: 2, 512>}, {pipeline_mode = #tpu.pipeline_mode<synchronous>, transform_indices = @transform_6, window_bounds = array<i64: 1, 2>}, {pipeline_mode = #tpu.pipeline_mode<synchronous>, transform_indices = @transform_7, window_bounds = array<i64: 2, 512>}, {pipeline_mode = #tpu.pipeline_mode<synchronous>, transform_indices = @transform_8, window_bounds = array<i64: 1, 512>}, {pipeline_mode = #tpu.pipeline_mode<synchronous>, transform_indices = @transform_9, window_bounds = array<i64: 512, 128>}, {pipeline_mode = #tpu.pipeline_mode<synchronous>, transform_indices = @transform_10, window_bounds = array<i64: 1, 128>}, {transform_indices = @transform_11, window_bounds = array<i64: 1, 16, 128>}]} {
    %c0 = arith.constant 0 : index
    %c0_0 = arith.constant 0 : index
    %c0_1 = arith.constant 0 : index
    %0 = vector.load %arg1[%c0, %c0_0, %c0_1] : memref<1x16x128xf32, #tpu.memory_space<vmem>>, vector<1x16x128xf32>
    %1 = vector.shape_cast %0 : vector<1x16x128xf32> to vector<16x128xf32>
    %2 = arith.truncf %1 : vector<16x128xf32> to vector<16x128xbf16>
    %c0_2 = arith.constant 0 : index
    %c0_3 = arith.constant 0 : index
    %3 = vector.load %arg2[%c0_2, %c0_3] : memref<128x512xbf16, #tpu.memory_space<vmem>>, vector<128x512xbf16>
    %cst = arith.constant dense<0.000000e+00> : vector<16x512xf32>
    %4 = tpu.matmul %2, %3, %cst {dimension_numbers = #tpu.dot_dimension_numbers<[1], [0], [0], [1], [0, 0, 1, 1], [], []>} : vector<16x128xbf16>, vector<128x512xbf16>, vector<16x512xf32> -> vector<16x512xf32>
    %c0_4 = arith.constant 0 : index
    %c0_5 = arith.constant 0 : index
    %5 = vector.load %arg3[%c0_4, %c0_5] : memref<1x512xf32, #tpu.memory_space<vmem>>, vector<1x512xf32>
    %6 = vector.broadcast %5 : vector<1x512xf32> to vector<16x512xf32>
    %7 = arith.addf %4, %6 : vector<16x512xf32>
    %cst_6 = arith.constant 0.000000e+00 : f32
    %8 = vector.broadcast %cst_6 : f32 to vector<16x512xf32>
    %9 = arith.subf %8, %7 : vector<16x512xf32>
    %10 = math.exp %9 : vector<16x512xf32>
    %cst_7 = arith.constant 1.000000e+00 : f32
    %11 = vector.broadcast %cst_7 : f32 to vector<16x512xf32>
    %12 = arith.addf %11, %10 : vector<16x512xf32>
    %13 = tpu.reciprocal %12 {approx = true} : vector<16x512xf32> -> vector<16x512xf32>
    %14 = arith.mulf %7, %13 : vector<16x512xf32>
    %c0_8 = arith.constant 0 : index
    %c0_9 = arith.constant 0 : index
    %15 = vector.load %arg4[%c0_8, %c0_9] : memref<9x512xf32, #tpu.memory_space<vmem>>, vector<9x512xf32>
    %16 = tpu.iota {dimensions = array<i32: 1>} : vector<16x512xi32>
    %17 = tpu.iota {dimensions = array<i32: 1>} : vector<1x16x512xi32>
    %18 = vector.shape_cast %17 : vector<1x16x512xi32> to vector<16x512xi32>
    %c32_i32 = arith.constant 32 : i32
    %19 = vector.broadcast %c32_i32 : i32 to vector<16x512xi32>
    %20 = arith.cmpi sge, %16, %19 : vector<16x512xi32>
    %c480_i32 = arith.constant 480 : i32
    %21 = vector.broadcast %c480_i32 : i32 to vector<16x512xi32>
    %22 = arith.cmpi slt, %16, %21 : vector<16x512xi32>
    %c1_i32 = arith.constant 1 : i32
    %23 = vector.broadcast %c1_i32 : i32 to vector<16x512xi32>
    %24 = arith.cmpi sge, %18, %23 : vector<16x512xi32>
    %c15_i32 = arith.constant 15 : i32
    %25 = vector.broadcast %c15_i32 : i32 to vector<16x512xi32>
    %26 = arith.cmpi slt, %18, %25 : vector<16x512xi32>
    %27 = vector.extract_strided_slice %15 {offsets = [4, 0], sizes = [1, 512], strides = [1, 1]} : vector<9x512xf32> to vector<1x512xf32>
    %28 = vector.shape_cast %27 : vector<1x512xf32> to vector<512xf32>
    %29 = vector.shape_cast %28 : vector<512xf32> to vector<1x512xf32>
    %30 = vector.broadcast %29 : vector<1x512xf32> to vector<16x512xf32>
    %31 = arith.mulf %14, %30 : vector<16x512xf32>
    %c32_i32_10 = arith.constant 32 : i32
    %32 = tpu.dynamic_rotate %14 by %c32_i32_10 dim 1 : vector<16x512xf32>, i32 -> vector<16x512xf32>
    %cst_11 = arith.constant 0.000000e+00 : f32
    %33 = vector.broadcast %cst_11 : f32 to vector<16x512xf32>
    %34 = arith.select %20, %32, %33 : vector<16x512xi1>, vector<16x512xf32>
    %c1_i32_12 = arith.constant 1 : i32
    %35 = tpu.dynamic_rotate %34 by %c1_i32_12 dim 0 : vector<16x512xf32>, i32 -> vector<16x512xf32>
    %cst_13 = arith.constant 0.000000e+00 : f32
    %36 = vector.broadcast %cst_13 : f32 to vector<16x512xf32>
    %37 = arith.select %24, %35, %36 : vector<16x512xi1>, vector<16x512xf32>
    %38 = vector.extract_strided_slice %15 {offsets = [0, 0], sizes = [1, 512], strides = [1, 1]} : vector<9x512xf32> to vector<1x512xf32>
    %39 = vector.shape_cast %38 : vector<1x512xf32> to vector<512xf32>
    %40 = vector.shape_cast %39 : vector<512xf32> to vector<1x512xf32>
    %41 = vector.broadcast %40 : vector<1x512xf32> to vector<16x512xf32>
    %42 = arith.mulf %37, %41 : vector<16x512xf32>
    %43 = arith.addf %31, %42 : vector<16x512xf32>
    %44 = vector.extract_strided_slice %15 {offsets = [3, 0], sizes = [1, 512], strides = [1, 1]} : vector<9x512xf32> to vector<1x512xf32>
    %45 = vector.shape_cast %44 : vector<1x512xf32> to vector<512xf32>
    %46 = vector.shape_cast %45 : vector<512xf32> to vector<1x512xf32>
    %47 = vector.broadcast %46 : vector<1x512xf32> to vector<16x512xf32>
    %48 = arith.mulf %34, %47 : vector<16x512xf32>
    %49 = arith.addf %43, %48 : vector<16x512xf32>
    %c15_i32_14 = arith.constant 15 : i32
    %50 = tpu.dynamic_rotate %34 by %c15_i32_14 dim 0 : vector<16x512xf32>, i32 -> vector<16x512xf32>
    %cst_15 = arith.constant 0.000000e+00 : f32
    %51 = vector.broadcast %cst_15 : f32 to vector<16x512xf32>
    %52 = arith.select %26, %50, %51 : vector<16x512xi1>, vector<16x512xf32>
    %53 = vector.extract_strided_slice %15 {offsets = [6, 0], sizes = [1, 512], strides = [1, 1]} : vector<9x512xf32> to vector<1x512xf32>
    %54 = vector.shape_cast %53 : vector<1x512xf32> to vector<512xf32>
    %55 = vector.shape_cast %54 : vector<512xf32> to vector<1x512xf32>
    %56 = vector.broadcast %55 : vector<1x512xf32> to vector<16x512xf32>
    %57 = arith.mulf %52, %56 : vector<16x512xf32>
    %58 = arith.addf %49, %57 : vector<16x512xf32>
    %c1_i32_16 = arith.constant 1 : i32
    %59 = tpu.dynamic_rotate %14 by %c1_i32_16 dim 0 : vector<16x512xf32>, i32 -> vector<16x512xf32>
    %cst_17 = arith.constant 0.000000e+00 : f32
    %60 = vector.broadcast %cst_17 : f32 to vector<16x512xf32>
    %61 = arith.select %24, %59, %60 : vector<16x512xi1>, vector<16x512xf32>
    %62 = vector.extract_strided_slice %15 {offsets = [1, 0], sizes = [1, 512], strides = [1, 1]} : vector<9x512xf32> to vector<1x512xf32>
    %63 = vector.shape_cast %62 : vector<1x512xf32> to vector<512xf32>
    %64 = vector.shape_cast %63 : vector<512xf32> to vector<1x512xf32>
    %65 = vector.broadcast %64 : vector<1x512xf32> to vector<16x512xf32>
    %66 = arith.mulf %61, %65 : vector<16x512xf32>
    %67 = arith.addf %58, %66 : vector<16x512xf32>
    %c15_i32_18 = arith.constant 15 : i32
    %68 = tpu.dynamic_rotate %14 by %c15_i32_18 dim 0 : vector<16x512xf32>, i32 -> vector<16x512xf32>
    %cst_19 = arith.constant 0.000000e+00 : f32
    %69 = vector.broadcast %cst_19 : f32 to vector<16x512xf32>
    %70 = arith.select %26, %68, %69 : vector<16x512xi1>, vector<16x512xf32>
    %71 = vector.extract_strided_slice %15 {offsets = [7, 0], sizes = [1, 512], strides = [1, 1]} : vector<9x512xf32> to vector<1x512xf32>
    %72 = vector.shape_cast %71 : vector<1x512xf32> to vector<512xf32>
    %73 = vector.shape_cast %72 : vector<512xf32> to vector<1x512xf32>
    %74 = vector.broadcast %73 : vector<1x512xf32> to vector<16x512xf32>
    %75 = arith.mulf %70, %74 : vector<16x512xf32>
    %76 = arith.addf %67, %75 : vector<16x512xf32>
    %c480_i32_20 = arith.constant 480 : i32
    %77 = tpu.dynamic_rotate %14 by %c480_i32_20 dim 1 : vector<16x512xf32>, i32 -> vector<16x512xf32>
    %cst_21 = arith.constant 0.000000e+00 : f32
    %78 = vector.broadcast %cst_21 : f32 to vector<16x512xf32>
    %79 = arith.select %22, %77, %78 : vector<16x512xi1>, vector<16x512xf32>
    %c1_i32_22 = arith.constant 1 : i32
    %80 = tpu.dynamic_rotate %79 by %c1_i32_22 dim 0 : vector<16x512xf32>, i32 -> vector<16x512xf32>
    %cst_23 = arith.constant 0.000000e+00 : f32
    %81 = vector.broadcast %cst_23 : f32 to vector<16x512xf32>
    %82 = arith.select %24, %80, %81 : vector<16x512xi1>, vector<16x512xf32>
    %83 = vector.extract_strided_slice %15 {offsets = [2, 0], sizes = [1, 512], strides = [1, 1]} : vector<9x512xf32> to vector<1x512xf32>
    %84 = vector.shape_cast %83 : vector<1x512xf32> to vector<512xf32>
    %85 = vector.shape_cast %84 : vector<512xf32> to vector<1x512xf32>
    %86 = vector.broadcast %85 : vector<1x512xf32> to vector<16x512xf32>
    %87 = arith.mulf %82, %86 : vector<16x512xf32>
    %88 = arith.addf %76, %87 : vector<16x512xf32>
    %89 = vector.extract_strided_slice %15 {offsets = [5, 0], sizes = [1, 512], strides = [1, 1]} : vector<9x512xf32> to vector<1x512xf32>
    %90 = vector.shape_cast %89 : vector<1x512xf32> to vector<512xf32>
    %91 = vector.shape_cast %90 : vector<512xf32> to vector<1x512xf32>
    %92 = vector.broadcast %91 : vector<1x512xf32> to vector<16x512xf32>
    %93 = arith.mulf %79, %92 : vector<16x512xf32>
    %94 = arith.addf %88, %93 : vector<16x512xf32>
    %c15_i32_24 = arith.constant 15 : i32
    %95 = tpu.dynamic_rotate %79 by %c15_i32_24 dim 0 : vector<16x512xf32>, i32 -> vector<16x512xf32>
    %cst_25 = arith.constant 0.000000e+00 : f32
    %96 = vector.broadcast %cst_25 : f32 to vector<16x512xf32>
    %97 = arith.select %26, %95, %96 : vector<16x512xi1>, vector<16x512xf32>
    %98 = vector.extract_strided_slice %15 {offsets = [8, 0], sizes = [1, 512], strides = [1, 1]} : vector<9x512xf32> to vector<1x512xf32>
    %99 = vector.shape_cast %98 : vector<1x512xf32> to vector<512xf32>
    %100 = vector.shape_cast %99 : vector<512xf32> to vector<1x512xf32>
    %101 = vector.broadcast %100 : vector<1x512xf32> to vector<16x512xf32>
    %102 = arith.mulf %97, %101 : vector<16x512xf32>
    %103 = arith.addf %94, %102 : vector<16x512xf32>
    %c0_26 = arith.constant 0 : index
    %c0_27 = arith.constant 0 : index
    %104 = vector.load %arg5[%c0_26, %c0_27] : memref<1x512xf32, #tpu.memory_space<vmem>>, vector<1x512xf32>
    %105 = vector.broadcast %104 : vector<1x512xf32> to vector<16x512xf32>
    %106 = arith.addf %103, %105 : vector<16x512xf32>
    %cst_28 = arith.constant 0.000000e+00 : f32
    %107 = vector.broadcast %cst_28 : f32 to vector<16x512xf32>
    %108 = arith.subf %107, %106 : vector<16x512xf32>
    %109 = math.exp %108 : vector<16x512xf32>
    %cst_29 = arith.constant 1.000000e+00 : f32
    %110 = vector.broadcast %cst_29 : f32 to vector<16x512xf32>
    %111 = arith.addf %110, %109 : vector<16x512xf32>
    %112 = tpu.reciprocal %111 {approx = true} : vector<16x512xf32> -> vector<16x512xf32>
    %113 = arith.mulf %106, %112 : vector<16x512xf32>
    %114 = vector.shape_cast %113 : vector<16x512xf32> to vector<1x16x512xf32>
    %cst_30 = arith.constant dense<0.000000e+00> : vector<1x512xf32>
    %115 = vector.multi_reduction <add>, %114, %cst_30 [1] : vector<1x16x512xf32> to vector<1x512xf32>
    %116 = vector.shape_cast %115 : vector<1x512xf32> to vector<1x1x512xf32>
    %c0_31 = arith.constant 0 : index
    %c0_32 = arith.constant 0 : index
    %117 = vector.load %arg6[%c0_31, %c0_32] : memref<2x512xf32, #tpu.memory_space<vmem>>, vector<2x512xf32>
    %118 = vector.shape_cast %117 : vector<2x512xf32> to vector<1x2x512xf32>
    %119 = vector.broadcast %116 : vector<1x1x512xf32> to vector<1x2x512xf32>
    %120 = arith.mulf %119, %118 : vector<1x2x512xf32>
    %cst_33 = arith.constant dense<0.000000e+00> : vector<1x2xf32>
    %121 = vector.multi_reduction <add>, %120, %cst_33 [2] : vector<1x2x512xf32> to vector<1x2xf32>
    %cst_34 = arith.constant 3.906250e-03 : f32
    %122 = vector.broadcast %cst_34 : f32 to vector<1x2xf32>
    %123 = arith.mulf %121, %122 : vector<1x2xf32>
    %c0_35 = arith.constant 0 : index
    %c0_36 = arith.constant 0 : index
    %124 = vector.load %arg7[%c0_35, %c0_36] : memref<1x2xf32, #tpu.memory_space<vmem>>, vector<1x2xf32>
    %125 = arith.addf %123, %124 : vector<1x2xf32>
    %cst_37 = arith.constant 0.000000e+00 : f32
    %126 = vector.broadcast %cst_37 : f32 to vector<1x2xf32>
    %127 = arith.subf %126, %125 : vector<1x2xf32>
    %128 = math.exp %127 : vector<1x2xf32>
    %cst_38 = arith.constant 1.000000e+00 : f32
    %129 = vector.broadcast %cst_38 : f32 to vector<1x2xf32>
    %130 = arith.addf %129, %128 : vector<1x2xf32>
    %131 = tpu.reciprocal %130 {approx = true} : vector<1x2xf32> -> vector<1x2xf32>
    %132 = arith.mulf %125, %131 : vector<1x2xf32>
    %133 = vector.shape_cast %132 : vector<1x2xf32> to vector<1x2x1xf32>
    %c0_39 = arith.constant 0 : index
    %c0_40 = arith.constant 0 : index
    %134 = vector.load %arg8[%c0_39, %c0_40] : memref<2x512xf32, #tpu.memory_space<vmem>>, vector<2x512xf32>
    %135 = vector.shape_cast %134 : vector<2x512xf32> to vector<1x2x512xf32>
    %136 = vector.broadcast %133 : vector<1x2x1xf32> to vector<1x2x512xf32>
    %137 = arith.mulf %136, %135 : vector<1x2x512xf32>
    %cst_41 = arith.constant dense<0.000000e+00> : vector<1x512xf32>
    %138 = vector.multi_reduction <add>, %137, %cst_41 [1] : vector<1x2x512xf32> to vector<1x512xf32>
    %c0_42 = arith.constant 0 : index
    %c0_43 = arith.constant 0 : index
    %139 = vector.load %arg9[%c0_42, %c0_43] : memref<1x512xf32, #tpu.memory_space<vmem>>, vector<1x512xf32>
    %140 = arith.addf %138, %139 : vector<1x512xf32>
    %cst_44 = arith.constant 0.000000e+00 : f32
    %141 = vector.broadcast %cst_44 : f32 to vector<1x512xf32>
    %142 = arith.subf %141, %140 : vector<1x512xf32>
    %143 = math.exp %142 : vector<1x512xf32>
    %cst_45 = arith.constant 1.000000e+00 : f32
    %144 = vector.broadcast %cst_45 : f32 to vector<1x512xf32>
    %145 = arith.addf %144, %143 : vector<1x512xf32>
    %146 = tpu.reciprocal %145 {approx = true} : vector<1x512xf32> -> vector<1x512xf32>
    %147 = vector.shape_cast %146 : vector<1x512xf32> to vector<1x1x512xf32>
    %148 = vector.broadcast %147 : vector<1x1x512xf32> to vector<1x16x512xf32>
    %149 = arith.mulf %114, %148 : vector<1x16x512xf32>
    %150 = vector.shape_cast %149 : vector<1x16x512xf32> to vector<16x512xf32>
    %151 = arith.truncf %150 : vector<16x512xf32> to vector<16x512xbf16>
    %c0_46 = arith.constant 0 : index
    %c0_47 = arith.constant 0 : index
    %152 = vector.load %arg10[%c0_46, %c0_47] : memref<512x128xbf16, #tpu.memory_space<vmem>>, vector<512x128xbf16>
    %cst_48 = arith.constant dense<0.000000e+00> : vector<16x128xf32>
    %153 = tpu.matmul %151, %152, %cst_48 {dimension_numbers = #tpu.dot_dimension_numbers<[1], [0], [0], [1], [0, 0, 1, 1], [], []>} : vector<16x512xbf16>, vector<512x128xbf16>, vector<16x128xf32> -> vector<16x128xf32>
    %c0_49 = arith.constant 0 : index
    %c0_50 = arith.constant 0 : index
    %154 = vector.load %arg11[%c0_49, %c0_50] : memref<1x128xf32, #tpu.memory_space<vmem>>, vector<1x128xf32>
    %155 = vector.broadcast %154 : vector<1x128xf32> to vector<16x128xf32>
    %156 = arith.addf %153, %155 : vector<16x128xf32>
    %157 = arith.addf %156, %1 : vector<16x128xf32>
    %158 = vector.shape_cast %157 : vector<16x128xf32> to vector<1x16x128xf32>
    %c0_51 = arith.constant 0 : index
    %c0_52 = arith.constant 0 : index
    %c0_53 = arith.constant 0 : index
    %159 = vector.load %arg12[%c0_51, %c0_52, %c0_53] : memref<1x16x128xf32, #tpu.memory_space<vmem>>, vector<1x16x128xf32>
    tpu.vector_store %arg12[%c0_51, %c0_52, %c0_53], %158 {strides = array<i32>} : memref<1x16x128xf32, #tpu.memory_space<vmem>>, vector<1x16x128xf32>,
    return
  }
  func.func @transform_0(%arg0: i32) -> (i32, i32, i32) {
    %c0_i32 = arith.constant 0 : i32
    %c0_i32_0 = arith.constant 0 : i32
    %c0_i32_1 = arith.constant 0 : i32
    return %arg0, %c0_i32, %c0_i32_0 : i32, i32, i32
  }
  func.func @transform_1(%arg0: i32) -> (i32, i32) {
    %c0_i32 = arith.constant 0 : i32
    %c0_i32_0 = arith.constant 0 : i32
    %c0_i32_1 = arith.constant 0 : i32
    return %c0_i32, %c0_i32_0 : i32, i32
  }
  func.func @transform_2(%arg0: i32) -> (i32, i32) {
    %c0_i32 = arith.constant 0 : i32
    %c0_i32_0 = arith.constant 0 : i32
    %c0_i32_1 = arith.constant 0 : i32
    return %c0_i32, %c0_i32_0 : i32, i32
  }
  func.func @transform_3(%arg0: i32) -> (i32, i32) {
    %c0_i32 = arith.constant 0 : i32
    %c0_i32_0 = arith.constant 0 : i32
    %c0_i32_1 = arith.constant 0 : i32
    return %c0_i32, %c0_i32_0 : i32, i32
  }
  func.func @transform_4(%arg0: i32) -> (i32, i32) {
    %c0_i32 = arith.constant 0 : i32
    %c0_i32_0 = arith.constant 0 : i32
    %c0_i32_1 = arith.constant 0 : i32
    return %c0_i32, %c0_i32_0 : i32, i32
  }
  func.func @transform_5(%arg0: i32) -> (i32, i32) {
    %c0_i32 = arith.constant 0 : i32
    %c0_i32_0 = arith.constant 0 : i32
    %c0_i32_1 = arith.constant 0 : i32
    return %c0_i32, %c0_i32_0 : i32, i32
  }
  func.func @transform_6(%arg0: i32) -> (i32, i32) {
    %c0_i32 = arith.constant 0 : i32
    %c0_i32_0 = arith.constant 0 : i32
    %c0_i32_1 = arith.constant 0 : i32
    return %c0_i32, %c0_i32_0 : i32, i32
  }
  func.func @transform_7(%arg0: i32) -> (i32, i32) {
    %c0_i32 = arith.constant 0 : i32
    %c0_i32_0 = arith.constant 0 : i32
    %c0_i32_1 = arith.constant 0 : i32
    return %c0_i32, %c0_i32_0 : i32, i32
  }
  func.func @transform_8(%arg0: i32) -> (i32, i32) {
    %c0_i32 = arith.constant 0 : i32
    %c0_i32_0 = arith.constant 0 : i32
    %c0_i32_1 = arith.constant 0 : i32
    return %c0_i32, %c0_i32_0 : i32, i32
  }
  func.func @transform_9(%arg0: i32) -> (i32, i32) {
    %c0_i32 = arith.constant 0 : i32
    %c0_i32_0 = arith.constant 0 : i32
    %c0_i32_1 = arith.constant 0 : i32
    return %c0_i32, %c0_i32_0 : i32, i32
  }
  func.func @transform_10(%arg0: i32) -> (i32, i32) {
    %c0_i32 = arith.constant 0 : i32
    %c0_i32_0 = arith.constant 0 : i32
    %c0_i32_1 = arith.constant 0 : i32
    return %c0_i32, %c0_i32_0 : i32, i32
  }
  func.func @transform_11(%arg0: i32) -> (i32, i32, i32) {
    %c0_i32 = arith.constant 0 : i32
    %c0_i32_0 = arith.constant 0 : i32
    %c0_i32_1 = arith.constant 0 : i32
    return %arg0, %c0_i32, %c0_i32_0 : i32, i32, i32
  }
}

</mosaic_0001>

<bundles_post_ra>
// kernel: tpu_custom_call.1
= control target key start
LH: loop header
LB: loop body
LE: loop exit
PB: predicated region body
PF: predicated region fallthrough
CT: control target
= control target key end

     0   :  { %s3984_s0 = inlined_call_operand.hbm [shape: f32[2,16,128], index: 0, kind: input, shape index: {}]   ;;  %s3985_s1 = inlined_call_operand.hbm [shape: bf16[128,512], index: 1, kind: input, shape index: {}]   ;;  %s3986_s2 = inlined_call_operand.hbm [shape: f32[1,512], index: 2, kind: input, shape index: {}]   ;;  %s3987_s3 = inlined_call_operand.hbm [shape: f32[9,512], index: 3, kind: input, shape index: {}]   ;;  %s3988_s4 = inlined_call_operand.hbm [shape: f32[1,512], index: 4, kind: input, shape index: {}]   ;;  %s3989_s5 = inlined_call_operand.vmem [shape: f32[2,512], index: 5, kind: input, shape index: {}]   ;;  %s3990_s6 = inlined_call_operand.hbm [shape: f32[1,2], index: 6, kind: input, shape index: {}]   ;;  %s3991_s7 = inlined_call_operand.hbm [shape: f32[2,512], index: 7, kind: input, shape index: {}]   ;;  %s3992_s8 = inlined_call_operand.vmem [shape: f32[1,512], index: 8, kind: input, shape index: {}]   ;;  %s3993_s9 = inlined_call_operand.hbm [shape: bf16[512,128], index: 9, kind: input, shape index: {}]   ;;  %s3994_s10 = inlined_call_operand.vmem [shape: f32[1,128], index: 10, kind: input, shape index: {}]   ;;  %s3995_s11 = inlined_call_operand.hbm [shape: f32[2,16,128], index: 11, kind: output, shape index: {}]  }
   0x1   :  { %4017 = sst [smem:[#allocation42_spill]] %s3985_s1 }
   0x2   :  { %4018 = sst [smem:[#allocation43_spill]] %s3986_s2 }
   0x3   :  { %4019 = sst [smem:[#allocation44_spill]] %s3987_s3 }
   0x4   :  { %4020 = sst [smem:[#allocation45_spill]] %s3988_s4 }
   0x5   :  { %4021 = sst [smem:[#allocation46_spill]] %s3990_s6 }
   0x6   :  { %16 = vsyncpa [#allocation3], 0 }
   0x7   :  { %18 = vsyncpa [#allocation3 + $0x1], 0 }
   0x8   :  { %19 = vsyncpa [#allocation6], 0 }
   0x9   :  { %20 = vsyncpa [#allocation9], 0 }
   0xa   :  { %21 = vsyncpa [#allocation12], 0 }
   0xb   :  { %22 = vsyncpa [#allocation15], 0 }
   0xc   :  { %23 = vsyncpa [#allocation4], 0 }
   0xd   :  { %25 = vsyncpa [#allocation4 + $0x1], 0  ;;  %s2989_s17 = smov 0   ;;  %s2991_s18 = smov 0  }
   0xe   :  { %s2993_s19 = smov 0   ;;  %s2995_s20 = smov 0  }
   0xf LB: > { %s2906_s21 = smov [#allocation5]   ;;  %s3010_s23 = sadd.s32 4294967295, %s2904_s20   ;;  %s2904_s20 = sphi %s2995_s20, %s4095_s20   ;;  %s2900_s19 = sphi %s2993_s19, %s4094_s19   ;;  %s2896_s18 = sphi %s2991_s18, %s4093_s18   ;;  %s2892_s17 = sphi %s2989_s17, %s4092_s17  }
  0x10   : > { %s310_s22 = sshll.u32 %s2906_s21, 4  ;;  %p2170_p0 = scmp.ge.s32.totalorder %s2904_s20, 1  ;;  %s311_s22 = int_to_ptr.vmem [resolvable:$true] %s310_s22 }
  0x11   : > { %p3996_p1 = scmp.eq.s32.totalorder %s3010_s23, 0  ;;  %p298_p2 = scmp.lt.s32.totalorder %s2904_s20, 3 }
  0x12   : > { %s2907_s25 = smov [#allocation8]   ;;  %s2908_s28 = smov [#allocation11]  }
  0x13   : > { %p3015_p3 = pnand %p2170_p0, %p298_p2  ;;  %s334_s26 = sshll.u32 %s2907_s25, 4  ;;  %s3028_s26 = int_to_ptr.vmem [resolvable:$true] %s334_s26 }
  0x14   : > { %s3030_s29 = sshll.u32 %s2908_s28, 4  ;;  %s2625_s12 = scalar_lea.vmem %s311_s22, 4096  ;;  %s363_s29 = int_to_ptr.vmem [resolvable:$true] %s3030_s29 }
  0x15   : > { %s4022_s24 = scalar_select %p3015_p3, 1, 0 }
  0x16   : > { %p2345_p5 = pneg %p3015_p3  ;;  %p2626_p8 = scmp.ne.s32.totalorder %s311_s22, %s2625_s12 }
  0x17   : > { %p2633_p11 = scmp.lt.s32.totalorder %s311_s22, %s311_s22  ;;  %p2634_p12 = scmp.lt.s32.totalorder %s2625_s12, %s2625_s12 }
  0x18   : > { %p3024_p6 = pnand %p2345_p5, %p3996_p1 }
  0x19   : > { %p2635_p13 = por %p2634_p12, %p2633_p11 }
  0x1a   : > { %p3034_p7 = pneg %p3024_p6 }
  0x1c   : > { %p2628_p9 = pnand %p2626_p8, %p3034_p7 }
  0x1e   : > { %p2629_p10 = pneg %p2628_p9 }
  0x20   : > { %p2636_p0 = pnand %p2635_p13, %p2629_p10 }
  0x22   : > { %2639 = shalt.err (!%p2636_p0)
}
  0x23   : > { %s2909_s13 = smov 256   ;;  %s2910_s14 = smov 16  }
  0x24   : > { %s4025_s1 = sld [smem:[#allocation42_spill]]  ;;  %s2651_s21 = scalar_lea.vmem %s3028_s26, 1024 }
  0x25   : > { %p2652_p2 = scmp.ne.s32.totalorder %s3028_s26, %s2651_s21  ;;  %p2659_p9 = scmp.lt.s32.totalorder %s3028_s26, %s3028_s26 }
  0x26   : > { %p2660_p10 = scmp.lt.s32.totalorder %s2651_s21, %s2651_s21 }
  0x27   : > { %p2654_p5 = pnand %p2652_p2, %p3034_p7 }
  0x28   : > { %p2661_p11 = por %p2660_p10, %p2659_p9 }
  0x29   : > { %p2655_p8 = pneg %p2654_p5 }
  0x2a   : > { %2348 = dma.hbm_to_vmem [thread:$0]  (!%p3024_p6), %s4025_s1, 4096, %s311_s22, [#allocation6], %s2909_s13, %s2909_s13, %s2910_s14  }
  0x2b   : > { %p2662_p12 = pnand %p2661_p11, %p2655_p8 }
  0x2d   : > { %2665 = shalt.err (!%p2662_p12)
}
  0x2e   : > { %s2911_s25 = smov 512   ;;  %s2912_s28 = smov 32  }
  0x2f   : > { %s4026_s3 = sld [smem:[#allocation44_spill]]  ;;  %s2677_s13 = scalar_lea.vmem %s363_s29, 16 }
  0x30   : > { %p2678_p13 = scmp.ne.s32.totalorder %s363_s29, %s2677_s13  ;;  %s2684_s14 = scalar_lea.vmem %s363_s29, 32 }
  0x31   : > { %p2685_p5 = scmp.lt.s32.totalorder %s363_s29, %s363_s29  ;;  %p2686_p8 = scmp.lt.s32.totalorder %s2684_s14, %s2677_s13 }
  0x32   : > { %p2680_p0 = pnand %p2678_p13, %p3034_p7 }
  0x33   : > { %p2687_p9 = por %p2686_p8, %p2685_p5 }
  0x34   : > { %p2681_p2 = pneg %p2680_p0 }
  0x35   : > { %2354 = dma.hbm_to_vmem [thread:$0]  (!%p3024_p6), %s4026_s3, 1024, %s3028_s26, [#allocation9], %s2911_s25, %s2911_s25, %s2912_s28  }
  0x36   : > { %p2688_p10 = pnand %p2687_p9, %p2681_p2 }
  0x38   : > { %2691 = shalt.err (!%p2688_p10)
}
  0x39   : > { %s4027_s6 = sld [smem:[#allocation46_spill]]  ;;  %s2913_s26 = smov [#allocation7]  }
  0x3a   : > { %s324_s21 = sshll.u32 %s2913_s26, 4  ;;  %s2914_s25 = smov [#allocation10]   ;;  %s325_s21 = int_to_ptr.vmem [resolvable:$true] %s324_s21 }
  0x3b   : > { %s348_s28 = sshll.u32 %s2914_s25, 4  ;;  %s2703_s12 = scalar_lea.vmem %s325_s21, 64  ;;  %s349_s28 = int_to_ptr.vmem [resolvable:$true] %s348_s28 }
  0x3c   : > { %p2704_p11 = scmp.ne.s32.totalorder %s325_s21, %s2703_s12  ;;  %p2711_p0 = scmp.lt.s32.totalorder %s325_s21, %s325_s21 }
  0x3d   : > { %p2712_p2 = scmp.lt.s32.totalorder %s2703_s12, %s2703_s12 }
  0x3e   : > { %p2706_p12 = pnand %p2704_p11, %p3034_p7 }
  0x3f   : > { %2360 = dma.hbm_to_vmem [thread:$0]  (!%p3024_p6), %s4027_s6, 16, %s363_s29, [#allocation12]  }
  0x40   : > { %p2707_p13 = pneg %p2706_p12  ;;  %p2713_p5 = por %p2712_p2, %p2711_p0 }
  0x42   : > { %p2714_p8 = pnand %p2713_p5, %p2707_p13 }
  0x44   : > { %2717 = shalt.err (!%p2714_p8)
}
  0x45   : > { %s4028_s2 = sld [smem:[#allocation43_spill]]  ;;  %s2729_s29 = scalar_lea.vmem %s349_s28, 64 }
  0x46   : > { %p2730_p9 = scmp.ne.s32.totalorder %s349_s28, %s2729_s29  ;;  %p2737_p11 = scmp.lt.s32.totalorder %s349_s28, %s349_s28 }
  0x47   : > { %p2738_p12 = scmp.lt.s32.totalorder %s2729_s29, %s2729_s29 }
  0x48   : > { %p2732_p10 = pnand %p2730_p9, %p3034_p7 }
  0x49   : > { %p2739_p1 = por %p2738_p12, %p2737_p11 }
  0x4a   : > { %p2733_p4 = pneg %p2732_p10 }
  0x4b   : > { %2351 = dma.hbm_to_vmem [thread:$0]  (!%p3024_p6), %s4028_s2, 64, %s325_s21, [#allocation6]  }
  0x4c   : > { %p2740_p3 = pnand %p2739_p1, %p2733_p4 }
  0x4e   : > { %2743 = shalt.err (!%p2740_p3)
}
  0x4f   : > { %s4029_s4 = sld [smem:[#allocation45_spill]]  ;;  %s2915_s16 = smov [#allocation13]  }
  0x50   : > { %s373_s26 = sshll.u32 %s2915_s16, 4  ;;  %s2916_s21 = smov [#allocation14]   ;;  %s374_s26 = int_to_ptr.vmem [resolvable:$true] %s373_s26 }
  0x51   : > { %s386_s25 = sshll.u32 %s2916_s21, 4  ;;  %s2755_s12 = scalar_lea.vmem %s374_s26, 128  ;;  %s387_s25 = int_to_ptr.vmem [resolvable:$true] %s386_s25 }
  0x52   : > { %p2756_p13 = scmp.ne.s32.totalorder %s374_s26, %s2755_s12  ;;  %p2763_p5 = scmp.lt.s32.totalorder %s374_s26, %s374_s26 }
  0x53   : > { %p2764_p1 = scmp.lt.s32.totalorder %s2755_s12, %s2755_s12 }
  0x54   : > { %p2758_p0 = pnand %p2756_p13, %p3034_p7 }
  0x55   : > { %2357 = dma.hbm_to_vmem [thread:$0]  (!%p3024_p6), %s4029_s4, 64, %s349_s28, [#allocation9]  }
  0x56   : > { %p2759_p2 = pneg %p2758_p0  ;;  %p2765_p3 = por %p2764_p1, %p2763_p5 }
  0x58   : > { %p2766_p4 = pnand %p2765_p3, %p2759_p2 }
  0x5a   : > { %2769 = shalt.err (!%p2766_p4)
}
  0x5b   : > { %2363 = dma.hbm_to_vmem [thread:$0]  (!%p3024_p6), %s3991_s7, 128, %s374_s26, [#allocation12]  }
  0x5c   : > { %s2781_s28 = scalar_lea.vmem %s387_s25, 4096  ;;  %p2789_p11 = scmp.lt.s32.totalorder %s387_s25, %s387_s25 }
  0x5d   : > { %p2782_p8 = scmp.ne.s32.totalorder %s387_s25, %s2781_s28  ;;  %p2790_p12 = scmp.lt.s32.totalorder %s2781_s28, %s2781_s28 }
  0x5f   : > { %p2784_p9 = pnand %p2782_p8, %p3034_p7  ;;  %p2791_p13 = por %p2790_p12, %p2789_p11 }
  0x61   : > { %p2785_p10 = pneg %p2784_p9 }
  0x63   : > { %p2792_p0 = pnand %p2791_p13, %p2785_p10 }
  0x65   : > { %2795 = shalt.err (!%p2792_p0)
}
  0x66   : > { %s2917_s29 = smov 64   ;;  %s2918_s30 = smov 4  }
  0x67   : > { %2366 = dma.hbm_to_vmem [thread:$0]  (!%p3024_p6), %s3993_s9, 4096, %s387_s25, [#allocation15], %s2917_s29, %s2917_s29, %s2918_s30  }
  0x68   : > { %s2169_s16 = sadd.s32 4294967294, %s2904_s20   ;;  %s3095_s26 = sadd.s32 1, %s2904_s20  }
  0x69   : > { %s38_s21 = sadd.s32 1, %s2900_s19  ;;  %s35_s12 = ssub.s32 %s2904_s20, %s3095_s26 }
  0x6a   : > { %p45_p7 = scmp.ne.s32.totalorder %s2900_s19, %s2896_s18  ;;  %p36_p2 = scmp.eq.s32.totalorder %s35_s12, 0 }
  0x6b   : > { %p46_p5 = scmp.eq.s32.totalorder %s2904_s20, 0  ;;  %p51_p1 = scmp.ne.s32.totalorder %s2896_s18, %s2892_s17 }
  0x6c   : > { %p285_p3 = scmp.eq.s32.totalorder %s3010_s23, 1  ;;  %p4030_p8 = scmp.eq.s32.totalorder %s3010_s23, 0 }
  0x6d   : > { %s3107_s22 = scalar_select %p36_p2, %s2900_s19, %s38_s21  }
  0x6e   : > { %p47_p4 = por %p46_p5, %p45_p7  ;;  %p3111_p9 = por %p4030_p8, %p51_p1 }
  0x6f   : > { %p3115_p6 = por %p285_p3, %p45_p7  ;;  %p291_p10 = scmp.eq.s32.totalorder %s2169_s16, 1 }
  0x70   : > { %s4031_s27 = scalar_select %p3111_p9, 1, 0 }
  0x71   : > { %s4032_s25 = scalar_select %p3115_p6, 1, 0 }
  0x72   : > { %p2382_p11 = scmp.lt.s32.totalorder %s2904_s20, 2  ;;  %s403_s13 = sand.u32 1, %s2900_s19  }
  0x73   : > { %p3121_p12 = por %p291_p10, %p51_p1  ;;  %s2179_s29 = sshll.u32 %s403_s13, 4 }
  0x74   : > { %s2267_s30 = sshll.u32 %s2904_s20, 8  ;;  %s407_s12 = scalar_lea.vmem [#allocation2], %s2179_s29 }
  0x75   : > { %s4033_s28 = scalar_select %p3121_p12, 1, 0 }
  0x76   : > { %s3129_s21 = scalar_lea.hbm %s3984_s0, %s2267_s30  ;;  %s414_s1 = sshll.u32 %s407_s12, 4  ;;  %s3135_s1 = int_to_ptr.vmem [resolvable:$true] %s414_s1 }
  0x77   : > { %p3131_p13 = pnand %p2382_p11, %p47_p4  ;;  %s3137_s2 = scalar_lea.sflag [#allocation3], %s403_s13 }
  0x78   : > { %s2796_s3 = scalar_lea.hbm %s3129_s21, 256  ;;  %s2801_s29 = scalar_lea.hbm %s3984_s0, 512 }
  0x79   : > { %p2797_p0 = scmp.ne.s32.totalorder %s3129_s21, %s2796_s3  ;;  %p2798_p7 = pneg %p3131_p13 }
  0x7a   : > { %p2802_p1 = scmp.lt.s32.totalorder %s3129_s21, %s3984_s0  ;;  %p2803_p3 = scmp.lt.s32.totalorder %s2801_s29, %s2796_s3 }
  0x7b   : > { %p2799_p2 = pnand %p2798_p7, %p2797_p0 }
  0x7c   : > { %p2804_p4 = por %p2803_p3, %p2802_p1 }
  0x7d   : > { %p2800_p5 = pneg %p2799_p2 }
  0x7f   : > { %p2805_p8 = pnand %p2804_p4, %p2800_p5 }
  0x81   : > { %2808 = shalt.err (!%p2805_p8)
}
  0x82   : > { %s2809_s13 = scalar_lea.vmem %s3135_s1, 256  ;;  %s2919_s4 = smov [#allocation2]  }
  0x83   : > { %p2810_p10 = scmp.ne.s32.totalorder %s3135_s1, %s2809_s13  ;;  %s2814_s6 = sshll.u32 %s2919_s4, 4  ;;  %s2815_s6 = int_to_ptr.vmem [resolvable:$false] %s2814_s6 }
  0x84   : > { %s2816_s30 = scalar_lea.vmem %s2815_s6, 512  ;;  %p2817_p2 = scmp.lt.s32.totalorder %s3135_s1, %s2815_s6 }
  0x85   : > { %p2812_p11 = pnand %p2810_p10, %p2798_p7  ;;  %p2818_p12 = scmp.lt.s32.totalorder %s2816_s30, %s2809_s13 }
  0x87   : > { %p2813_p0 = pneg %p2812_p11  ;;  %p2819_p6 = por %p2818_p12, %p2817_p2 }
  0x89   : > { %p2820_p9 = pnand %p2819_p6, %p2813_p0 }
  0x8b   : > { %2823 = shalt.err (!%p2820_p9)
}
  0x8c   : > { %s2920_s3 = smov 128   ;;  %s2921_s14 = smov 8  }
  0x8d   : > { %2370 = dma.hbm_to_vmem [thread:$0]  (!%p3131_p13), %s3129_s21, 256, %s3135_s1, %s3137_s2, %s2920_s3, %s2920_s3, %s2921_s14  }
  0x8e   : > { %p4035_p7 = scmp.ne.s32.totalorder %s4022_s24, 0 }
  0x90   : > { %426 = sbr.rel (%p4035_p7) target bundleno = 1265 (0x4f1), region = 64 }
  0x95   : > { %s3161_s4 = sand.u32 1, %s2896_s18   ;;  %p4036_p9 = scmp.ne.s32.totalorder %s4031_s27, 0 }
  0x96   : > { %s2183_s6 = sshll.u32 %s3161_s4, 4  ;;  %s429_s29 = scalar_lea.sflag [#allocation3], %s3161_s4 }
  0x97   : > { %s3167_s15 = scalar_lea.vmem [#allocation2], %s2183_s6 }
  0x98   : > { %2867 = dma.done.wait (%p4036_p9), %s429_s29, 256  }
  0x99   : > { %2869 = vsyncadd (%p4036_p9), %s429_s29, 4294967040  ;;  %p4037_p6 = scmp.eq.s32.totalorder %s3010_s23, 0 }
  0x9b   : > { %2871 = dma.done.wait (%p4037_p6), [#allocation6], 4160   ;;  %p4038_p12 = pmov %p4037_p6 }
  0x9c   : > { %p4039_p13 = pmov %p4037_p6 }
  0x9d   : > { %2873 = vsyncadd (%p4038_p12), [#allocation6], 4294963136 }
  0x9e   : > { %2875 = dma.done.wait (%p4039_p13), [#allocation9], 1088   ;;  %p4040_p5 = pmov %p4037_p6 }
  0xa0   : > { %2877 = vsyncadd (%p4040_p5), [#allocation9], 4294966208  ;;  %p4041_p1 = pmov %p4040_p5 }
  0xa2   : > { %2879 = dma.done.wait (%p4041_p1), [#allocation12], 144   ;;  %p4042_p3 = pmov %p4041_p1 }
  0xa3   : > { %p4043_p4 = pmov %p4041_p1 }
  0xa4   : > { %2881 = vsyncadd (%p4042_p3), [#allocation12], 4294967152 }
  0xa5   : > { %2883 = dma.done.wait (%p4043_p4), [#allocation15], 4096   ;;  %p4044_p8 = pmov %p4041_p1 }
  0xa6   : > { %v2922_v0 = vmov 0   ;;  %v2446_v1 = vld [vmem:[#allocation5 + $0xe4] ss:$16 sps:$4 sm:$0xff]   ;;  %v2448_v2 = vld [vmem:[#allocation5 + $0xec] ss:$16 sps:$4 sm:$0xff]   ;;  %v537_v36 = vlaneseq  ;;  %s2923_s1 = smov 32  }
  0xa7   : > { %2885 = vsyncadd (%p4044_p8), [#allocation15], 4294963200  ;;  %749 = vmatprep.mubr.bf16.mxu0 %v2922_v0  ;;  %792 = vmatprep.mubr.bf16.mxu1 %v2922_v0  ;;  %v2450_v3 = vld [vmem:[#allocation5 + $0xe0] ss:$16 sps:$4 sm:$0xff]   ;;  %v2451_v4 = vld [vmem:[#allocation5 + $0xe8] ss:$16 sps:$4 sm:$0xff]  }
  0xa8   : > { %2444 = vset.pattern.permute.xlu1 %v2922_v0  ;;  %2445 = vset.pattern.permute.xlu0 %v2922_v0  ;;  %v2452_v5 = vld [vmem:[#allocation5 + $0xc4] ss:$16 sps:$4 sm:$0xff]   ;;  %v2454_v6 = vld [vmem:[#allocation5 + $0xcc] ss:$16 sps:$4 sm:$0xff]   ;;  %v2456_v7 = vld [vmem:[#allocation5 + $0xc0] ss:$16 sps:$4 sm:$0xff]  }
  0xa9   : > { %717 = vmatprep.subr.bf16.mxu0 %v2446_v1  ;;  %760 = vmatprep.subr.bf16.mxu1 %v2448_v2  ;;  %v2457_v8 = vld [vmem:[#allocation5 + $0xc8] ss:$16 sps:$4 sm:$0xff]   ;;  %v2458_v9 = vld [vmem:[#allocation5 + $0xa4] ss:$16 sps:$4 sm:$0xff]   ;;  %v2460_v10 = vld [vmem:[#allocation5 + $0xac] ss:$16 sps:$4 sm:$0xff]  }
  0xaa   : > { %718 = vmatpush1.bf16.msra.mxu0 %v2450_v3  ;;  %761 = vmatpush1.bf16.msra.mxu1 %v2451_v4  ;;  %v2462_v11 = vld [vmem:[#allocation5 + $0xa0] ss:$16 sps:$4 sm:$0xff]   ;;  %v2463_v12 = vld [vmem:[#allocation5 + $0xa8] ss:$16 sps:$4 sm:$0xff]   ;;  %v2464_v13 = vld [vmem:[#allocation5 + $0x84] ss:$16 sps:$4 sm:$0xff]  }
  0xab   : > { %719 = vmatprep.subr.bf16.mxu0 %v2452_v5  ;;  %762 = vmatprep.subr.bf16.mxu1 %v2454_v6  ;;  %v2466_v14 = vld [vmem:[#allocation5 + $0x8c] ss:$16 sps:$4 sm:$0xff]   ;;  %v2468_v15 = vld [vmem:[#allocation5 + $0x80] ss:$16 sps:$4 sm:$0xff]   ;;  %v2469_v16 = vld [vmem:[#allocation5 + $0x88] ss:$16 sps:$4 sm:$0xff]  }
  0xac   : > { %v2470_v17 = vld [vmem:[#allocation5 + $0x64] ss:$16 sps:$4 sm:$0xff]   ;;  %v2472_v18 = vld [vmem:[#allocation5 + $0x6c] ss:$16 sps:$4 sm:$0xff]   ;;  %v2474_v19 = vld [vmem:[#allocation5 + $0x60] ss:$16 sps:$4 sm:$0xff]  }
  0xad   : > { %v2475_v20 = vld [vmem:[#allocation5 + $0x68] ss:$16 sps:$4 sm:$0xff]   ;;  %v2476_v21 = vld [vmem:[#allocation5 + $0x44] ss:$16 sps:$4 sm:$0xff]   ;;  %v2478_v22 = vld [vmem:[#allocation5 + $0x4c] ss:$16 sps:$4 sm:$0xff]  }
  0xae   : > { %720 = vmatpush1.bf16.msra.mxu0 %v2456_v7  ;;  %763 = vmatpush1.bf16.msra.mxu1 %v2457_v8  ;;  %v2480_v23 = vld [vmem:[#allocation5 + $0x40] ss:$16 sps:$4 sm:$0xff]   ;;  %v2481_v24 = vld [vmem:[#allocation5 + $0x48] ss:$16 sps:$4 sm:$0xff]   ;;  %v2482_v25 = vld [vmem:[#allocation5 + $0x24] ss:$16 sps:$4 sm:$0xff]  }
  0xaf   : > { %721 = vmatprep.subr.bf16.mxu0 %v2458_v9  ;;  %764 = vmatprep.subr.bf16.mxu1 %v2460_v10  ;;  %v2484_v26 = vld [vmem:[#allocation5 + $0x2c] ss:$16 sps:$4 sm:$0xff]   ;;  %v2486_v27 = vld [vmem:[#allocation5 + $0x20] ss:$16 sps:$4 sm:$0xff]   ;;  %v2487_v28 = vld [vmem:[#allocation5 + $0x28] ss:$16 sps:$4 sm:$0xff]  }
  0xb0   : > { %v2488_v29 = vld [vmem:[#allocation5 + $0x4] ss:$16 sps:$4 sm:$0xff]   ;;  %v2490_v30 = vld [vmem:[#allocation5 + $0xc] ss:$16 sps:$4 sm:$0xff]   ;;  %v2492_v31 = vld [vmem:[#allocation5] ss:$16 sps:$4 sm:$0xff]  }
  0xb1   : > { %v2493_v32 = vld [vmem:[#allocation5 + $0x8] ss:$16 sps:$4 sm:$0xff]   ;;  %v500_v33 = vld [vmem:[%s3167_s15] sm:$0xff]  ;;  %v3192_v37 = vshrl.u32 %v537_v36, 7  ;;  %s2924_s2 = smov 96   ;;  %vm1504_vm8 = vcmask 1041408  }
  0xb2   : > { %722 = vmatpush1.bf16.msra.mxu0 %v2462_v11  ;;  %765 = vmatpush1.bf16.msra.mxu1 %v2463_v12  ;;  %v501_v34 = vld [vmem:[%s3167_s15 + $0x8] sm:$0xff]  ;;  %v535_v40 = vld [vmem:[#allocation7] sm:$0xf]  ;;  %s498_s30 = scalar_lea.vmem [#allocation16], %s2183_s6  ;;  %s2268_s14 = sshll.u32 %s3010_s23, 8 }
  0xb3   : > { %723 = vmatprep.subr.bf16.mxu0 %v2464_v13  ;;  %766 = vmatprep.subr.bf16.mxu1 %v2466_v14  ;;  %v502_v35 = vpack.c.bf16 %v501_v34, %v500_v33  ;;  %v3195_v38 = vsub.s32 0, %v3192_v37  ;;  %v3198_v39 = vsub.s32 2, %v3192_v37  ;;  %v3201_v41 = vsub.s32 1, %v3192_v37  ;;  %s2029_s3 = sshll.u32 %s498_s30, 4  ;;  %s2016_s6 = scalar_lea.sflag [#allocation4], %s3161_s4  ;;  %s3935_s3 = int_to_ptr.vmem [resolvable:$true] %s2029_s3 }
  0xb4   : > { %v3204_v42 = vsub.s32 3, %v3192_v37  ;;  %vm944_vm0 = vcmp.lt.s32.totalorder %v3192_v37, 1  ;;  %vm1033_vm1 = vcmp.lt.s32.totalorder %v3192_v37, 7  ;;  %vm875_vm2 = vcmp.ge.s32.totalorder %v3192_v37, 1  ;;  %s2824_s24 = scalar_lea.vmem %s3935_s3, 256  ;;  %p4089_p11 = scmp.ne.s32.totalorder %s4032_s25, 0 }
  0xb5   : > { %4045 = vst [vmem:[#allocation23_spill] sm:$0xff] %v3195_v38  ;;  %4046 = vst [vmem:[#allocation24_spill] sm:$0xff] %v3198_v39  ;;  %v540_v43 = vrot.slane %v535_v40, %v3195_v38  ;;  %v548_v44 = vrot.slane %v535_v40, %v3198_v39  ;;  %v544_v45 = vrot.slane %v535_v40, %v3201_v41  ;;  %p2825_p10 = scmp.ne.s32.totalorder %s3935_s3, %s2824_s24  ;;  %s2926_s23 = smov [#allocation16]  }
  0xb6   : > { %724 = vmatpush1.bf16.msra.mxu0 %v2468_v15  ;;  %767 = vmatpush1.bf16.msra.mxu1 %v2469_v16  ;;  %4047 = vst [vmem:[#allocation25_spill] sm:$0xff] %v3201_v41  ;;  %4048 = vst [vmem:[#allocation26_spill] sm:$0xff] %v3204_v42  ;;  %v552_v46 = vrot.slane %v535_v40, %v3204_v42  ;;  %s2828_s27 = sshll.u32 %s2926_s23, 4  ;;  %s2829_s27 = int_to_ptr.vmem [resolvable:$false] %s2828_s27 }
  0xb7   : > { %725 = vmatprep.subr.bf16.mxu0 %v2470_v17  ;;  %768 = vmatprep.subr.bf16.mxu1 %v2472_v18  ;;  %p2826_p0 = pnand %p2825_p10, %p4089_p11  ;;  %s2830_s21 = scalar_lea.vmem %s2829_s27, 512 }
  0xb8   : > { %p2831_p7 = scmp.lt.s32.totalorder %s3935_s3, %s2829_s27  ;;  %p2832_p9 = scmp.lt.s32.totalorder %s2830_s21, %s2824_s24 }
  0xb9   : > { %p2827_p2 = pneg %p2826_p0 }
  0xba   : > { %726 = vmatpush1.bf16.msra.mxu0 %v2474_v19  ;;  %769 = vmatpush1.bf16.msra.mxu1 %v2475_v20  ;;  %p2833_p6 = por %p2832_p9, %p2831_p7 }
  0xbb   : > { %727 = vmatprep.subr.bf16.mxu0 %v2476_v21  ;;  %770 = vmatprep.subr.bf16.mxu1 %v2478_v22 }
  0xbc   : > { %p2834_p12 = pnand %p2833_p6, %p2827_p2 }
  0xbe   : > { %728 = vmatpush1.bf16.msra.mxu0 %v2480_v23  ;;  %771 = vmatpush1.bf16.msra.mxu1 %v2481_v24 }
  0xbf   : > { %729 = vmatprep.subr.bf16.mxu0 %v2482_v25  ;;  %772 = vmatprep.subr.bf16.mxu1 %v2484_v26 }
  0xc2   : > { %730 = vmatpush1.bf16.msra.mxu0 %v2486_v27  ;;  %773 = vmatpush1.bf16.msra.mxu1 %v2487_v28 }
  0xc3   : > { %731 = vmatprep.subr.bf16.mxu0 %v2488_v29  ;;  %774 = vmatprep.subr.bf16.mxu1 %v2490_v30 }
  0xc6   : > { %732 = vmatpush1.bf16.msra.mxu0 %v2492_v31  ;;  %775 = vmatpush1.bf16.msra.mxu1 %v2493_v32 }
  0xc9   : > { %750 = vmatmul.mubr.bf16.vlgmr.msra.gmra.mxu0 %v502_v35  ;;  %793 = vmatmul.mubr.bf16.vlgmr.msra.gmra.mxu1 %v502_v35 }
 0x189   : > { %v751_v47 = vpop.f32.mrf.mxu0  ;;  %v794_v48 = vpop.f32.mrf.mxu1 }
 0x18a   : > { %v3210_v49 = vadd.f32 %v751_v47, %v540_v43  ;;  %v3212_v50 = vadd.f32 %v794_v48, %v548_v44 }
 0x18b   : > { %v753_v51 = vpop.f32.mrf.mxu0  ;;  %v796_v52 = vpop.f32.mrf.mxu1 }
 0x18c   : > { %v803_v53 = vsub.f32 0.0, %v3210_v49  ;;  %v805_v54 = vsub.f32 0.0, %v3212_v50  ;;  %v3216_v55 = vadd.f32 %v753_v51, %v544_v45  ;;  %v797_v56 = vadd.f32 %v796_v52, %v552_v46 }
 0x18d   : > { %v755_v57 = vpop.f32.mrf.mxu0  ;;  %v798_v58 = vpop.f32.mrf.mxu1 }
 0x18e   : > { %v811_v59 = vmul.f32 1.442695, %v803_v53  ;;  %v815_v60 = vmul.f32 1.442695, %v805_v54  ;;  %v804_v61 = vsub.f32 0.0, %v3216_v55  ;;  %v806_v62 = vsub.f32 0.0, %v797_v56 }
 0x18f   : > { %v756_v63 = vadd.f32 %v755_v57, %v540_v43  ;;  %v799_v0 = vadd.f32 %v798_v58, %v548_v44  ;;  %v757_v1 = vpop.f32.mrf.mxu0  ;;  %v800_v2 = vpop.f32.mrf.mxu1 }
 0x190   : > { %2528 = vpow2.f32 %v811_v59  ;;  %v813_v3 = vmul.f32 1.442695, %v804_v61  ;;  %v817_v4 = vmul.f32 1.442695, %v806_v62  ;;  %v758_v5 = vadd.f32 %v757_v1, %v544_v45 }
 0x191   : > { %2530 = vpow2.f32 %v815_v60  ;;  %v807_v6 = vsub.f32 0.0, %v756_v63  ;;  %v809_v7 = vsub.f32 0.0, %v799_v0  ;;  %v801_v8 = vadd.f32 %v800_v2, %v552_v46 }
 0x192   : > { %2532 = vpow2.f32 %v813_v3  ;;  %v808_v9 = vsub.f32 0.0, %v758_v5 }
 0x193   : > { %2534 = vpow2.f32 %v817_v4  ;;  %v819_v10 = vmul.f32 1.442695, %v807_v6  ;;  %v823_v11 = vmul.f32 1.442695, %v809_v7  ;;  %v810_v12 = vsub.f32 0.0, %v801_v8 }
 0x194   : > { %v821_v13 = vmul.f32 1.442695, %v808_v9 }
 0x195   : > { %2536 = vpow2.f32 %v819_v10  ;;  %v825_v14 = vmul.f32 1.442695, %v810_v12 }
 0x196   : > { %2538 = vpow2.f32 %v823_v11 }
 0x197   : > { %2540 = vpow2.f32 %v821_v13 }
 0x198   : > { %2542 = vpow2.f32 %v825_v14 }
 0x19d   : > { %v2529_v15 = vpop.eup %2528 }
 0x19e   : > { %v2531_v16 = vpop.eup %2530  ;;  %v827_v17 = vadd.f32 1.0, %v2529_v15 }
 0x19f   : > { %v2533_v18 = vpop.eup %2532  ;;  %v829_v19 = vadd.f32 1.0, %v2531_v16 }
 0x1a0   : > { %v2535_v20 = vpop.eup %2534  ;;  %2544 = vrcp.f32 %v827_v17  ;;  %v828_v21 = vadd.f32 1.0, %v2533_v18 }
 0x1a1   : > { %v830_v22 = vadd.f32 1.0, %v2535_v20  ;;  %2546 = vrcp.f32 %v829_v19 }
 0x1a2   : > { %v2537_v23 = vpop.eup %2536 }
 0x1a3   : > { %v2539_v24 = vpop.eup %2538  ;;  %2548 = vrcp.f32 %v830_v22  ;;  %v831_v25 = vadd.f32 1.0, %v2537_v23  ;;  %v3345_v22 = vld [vmem:[#allocation8] sm:$0xff]  ;;  %v3347_v23 = vld [vmem:[#allocation8 + $0x18] sm:$0xff] }
 0x1a4   : > { %v2541_v26 = vpop.eup %2540  ;;  %2550 = vrcp.f32 %v828_v21  ;;  %v833_v27 = vadd.f32 1.0, %v2539_v24  ;;  %v881_v21 = vsub.s32 4, %v3192_v37  ;;  %v3349_v24 = vld [vmem:[#allocation8 + $0x8] sm:$0xff] }
 0x1a5   : > { %v2543_v28 = vpop.eup %2542  ;;  %2552 = vrcp.f32 %v831_v25  ;;  %v832_v29 = vadd.f32 1.0, %v2541_v26  ;;  %v3351_v25 = vld [vmem:[#allocation8 + $0x10] sm:$0xff]  ;;  %v3354_v26 = vadd.s32 8, %v3192_v37 }
 0x1a6   : > { %2554 = vrcp.f32 %v833_v27  ;;  %v834_v30 = vadd.f32 1.0, %v2543_v28  ;;  %v1164_v27 = vsub.s32 7, %v3192_v37  ;;  %v3358_v28 = vand.u32 127, %v537_v36 }
 0x1a7   : > { %2556 = vrcp.f32 %v832_v29  ;;  %v882_v29 = vrot.slane %v3345_v22, %v881_v21  ;;  %vm878_vm3 = vcmp.lt.s32.totalorder %v3354_v26, 15  ;;  %v1121_v36 = vrot.slane %v3347_v23, %v3201_v41 }
 0x1a8   : > { %2558 = vrcp.f32 %v834_v30  ;;  %v894_v30 = vrot.slane %v3347_v23, %v881_v21  ;;  %vm919_vm4 = vcmp.lt.s32.totalorder %v3358_v28, 32  ;;  %vm867_vm5 = vcmp.ge.s32.totalorder %v3358_v28, 32 }
 0x1a9   : > { %vm1210_vm6 = vcmp.lt.s32.totalorder %v3358_v28, 96 }
 0x1ad   : > { %v2545_v31 = vpop.eup %2544 }
 0x1ae   : > { %v3220_v32 = vmul.f32 %v2545_v31, %v3210_v49  ;;  %v2547_v33 = vpop.eup %2546  ;;  %v1109_v31 = vrot.slane %v3345_v22, %v3201_v41 }
 0x1af   : > { %v3227_v44 = vmul.f32 %v2547_v33, %v3212_v50  ;;  %v886_v33 = vrot.slane %v3349_v24, %v881_v21 }
 0x1b0   : > { %v2549_v34 = vpop.eup %2548  ;;  %903 = vrot.lane.b32.xlu0 %v3220_v32, %s2923_s1  ;;  %v1082_v51 = vrot.slane %v3220_v32, 7  ;;  %v1138_v6 = vrot.slane %v3220_v32, 1 }
 0x1b1   : > { %v2551_v35 = vpop.eup %2550  ;;  %v3224_v40 = vmul.f32 %v2549_v34, %v797_v56  ;;  %v1084_v57 = vrot.slane %v3227_v44, 7  ;;  %v1140_v11 = vrot.slane %v3227_v44, 1  ;;  %v890_v34 = vrot.slane %v3351_v25, %v881_v21 }
 0x1b2   : > { %v2553_v43 = vpop.eup %2552  ;;  %v3240_v50 = vmul.f32 %v2551_v35, %v3216_v55  ;;  %v1052_v35 = vsub.s32 6, %v3192_v37 }
 0x1b3   : > { %v2555_v45 = vpop.eup %2554  ;;  %v3229_v46 = vmul.f32 %v2553_v43, %v756_v63  ;;  %915 = vrot.lane.b32.xlu1 %v3224_v40, %s2923_s1  ;;  %v1085_v60 = vrot.slane %v3224_v40, 7  ;;  %v1141_v15 = vrot.slane %v3224_v40, 1  ;;  %v1117_v43 = vrot.slane %v3351_v25, %v3201_v41 }
 0x1b4   : > { %v2557_v47 = vpop.eup %2556  ;;  %v3233_v48 = vmul.f32 %v2555_v45, %v799_v0  ;;  %911 = vrot.lane.b32.xlu0 %v3227_v44, %s2923_s1  ;;  %v1083_v62 = vrot.slane %v3240_v50, 7  ;;  %v1139_v7 = vrot.slane %v3240_v50, 1  ;;  %v1113_v45 = vrot.slane %v3349_v24, %v3201_v41 }
 0x1b5   : > { %v2559_v49 = vpop.eup %2558  ;;  %v1086_v52 = vrot.slane %v3229_v46, 7  ;;  %v3243_v53 = vmul.f32 %v2557_v47, %v758_v5  ;;  %v1142_v63 = vrot.slane %v3229_v46, 1  ;;  %v1165_v47 = vrot.slane %v3345_v22, %v1164_v27 }
 0x1b6   : > { %v1088_v54 = vrot.slane %v3233_v48, 7  ;;  %v3246_v56 = vmul.f32 %v2559_v49, %v801_v8  ;;  %v1144_v8 = vrot.slane %v3233_v48, 1  ;;  %v1169_v49 = vrot.slane %v3349_v24, %v1164_v27 }
 0x1b7   : > { %v1087_v58 = vrot.slane %v3243_v53, 7  ;;  %913 = vrot.lane.b32.xlu1 %v3233_v48, %s2923_s1  ;;  %v3254_v59 = vsel %vm944_vm0, %v1082_v51, %v1086_v52  ;;  %v3258_v55 = vsel %vm944_vm0, %v1086_v52, %v1082_v51  ;;  %v1143_v1 = vrot.slane %v3243_v53, 1 }
 0x1b8   : > { %v1089_v61 = vrot.slane %v3246_v56, 7  ;;  %907 = vrot.lane.b32.xlu0 %v3240_v50, %s2923_s1  ;;  %v3268_v0 = vsel %vm944_vm0, %v1084_v57, %v1088_v54  ;;  %v3281_v4 = vsel %vm944_vm0, %v1088_v54, %v1084_v57  ;;  %v1145_v9 = vrot.slane %v3246_v56, 1 }
 0x1b9   : > { %v3287_v5 = vsel %vm944_vm0, %v1083_v62, %v1087_v58  ;;  %v3297_v10 = vsel %vm944_vm0, %v1087_v58, %v1083_v62  ;;  %v3302_v12 = vsel %vm1033_vm1, %v1138_v6, %v1142_v63  ;;  %v3306_v13 = vsel %vm1033_vm1, %v1139_v7, %v1143_v1 }
 0x1ba   : > { %v3273_v2 = vsel %vm944_vm0, %v1085_v60, %v1089_v61  ;;  %v3277_v3 = vsel %vm944_vm0, %v1089_v61, %v1085_v60  ;;  %v3310_v14 = vsel %vm1033_vm1, %v1142_v63, %v1138_v6  ;;  %v3317_v16 = vsel %vm1033_vm1, %v1143_v1, %v1139_v7 }
 0x1bb   : > { %1196 = vrot.lane.b32.xlu1 %v3229_v46, %s2924_s2  ;;  %v3322_v17 = vsel %vm1033_vm1, %v1140_v11, %v1144_v8  ;;  %v3326_v18 = vsel %vm1033_vm1, %v1141_v15, %v1145_v9  ;;  %v3330_v19 = vsel %vm1033_vm1, %v1144_v8, %v1140_v11  ;;  %v3334_v20 = vsel %vm1033_vm1, %v1145_v9, %v1141_v15 }
 0x1bc   : > { %905 = vrot.lane.b32.xlu0 %v3229_v46, %s2923_s1  ;;  %v1173_v51 = vrot.slane %v3351_v25, %v1164_v27  ;;  %v3381_v52 = vrot.slane %v3345_v22, %v3204_v42  ;;  %v3385_v54 = vrot.slane %v3347_v23, %v3204_v42  ;;  %v1177_v57 = vrot.slane %v3347_v23, %v1164_v27 }
 0x1bd   : > { %v3391_v58 = vrot.slane %v3349_v24, %v3204_v42  ;;  %v3395_v60 = vrot.slane %v3351_v25, %v3204_v42  ;;  %v3399_v61 = vrot.slane %v3345_v22, %v3195_v38  ;;  %v1098_v62 = vsel %vm875_vm2, %v3258_v55, 0.0 }
 0x1be   : > { %v3406_v1 = vrot.slane %v3347_v23, %v3195_v38  ;;  %v3409_v6 = vrot.slane %v3345_v22, %v1052_v35  ;;  %v3412_v7 = vrot.slane %v3347_v23, %v1052_v35  ;;  %v3415_v8 = vmul.f32 %v882_v29, %v3220_v32 }
 0x1bf   : > { %917 = vrot.lane.b32.xlu1 %v3246_v56, %s2923_s1  ;;  %v3418_v9 = vmul.f32 %v894_v30, %v3224_v40  ;;  %v1101_v55 = vsel %vm875_vm2, %v3277_v3, 0.0  ;;  %v3424_v11 = vmul.f32 %v890_v34, %v3227_v44  ;;  %v3427_v15 = vmul.f32 %v886_v33, %v3240_v50 }
 0x1c0   : > { %1194 = vrot.lane.b32.xlu0 %v3220_v32, %s2924_s2  ;;  %v3430_v21 = vmul.f32 %v894_v30, %v3246_v56  ;;  %v3433_v27 = vmul.f32 %v882_v29, %v3229_v46  ;;  %v3435_v32 = vmul.f32 %v1109_v31, %v1098_v62  ;;  %v3441_v3 = vmul.f32 %v1109_v31, %v3254_v59 }
 0x1c1   : > { %v3452_v29 = vmul.f32 %v1121_v36, %v1101_v55  ;;  %v3459_v59 = vrot.slane %v3349_v24, %v3195_v38  ;;  %v1158_v30 = vsel %vm878_vm3, %v3310_v14, 0.0  ;;  %v3476_v31 = vrot.slane %v3349_v24, %v1052_v35  ;;  %v3498_v55 = vld [vmem:[#allocation10] sm:$0xf] }
 0x1c2   : > { %4051 = vst [vmem:[#allocation29_spill] sm:$0xff] %v3498_v55 }
 0x1c3   : > { %909 = vrot.lane.b32.xlu1 %v3243_v53, %s2923_s1 }
 0x1c4   : > { %1198 = vrot.lane.b32.xlu0 %v3240_v50, %s2924_s2  ;;  %v1100_v50 = vsel %vm875_vm2, %v3281_v4, 0.0  ;;  %v3466_v4 = vrot.slane %v3351_v25, %v3195_v38 }
 0x1c7   : > { %1204 = vrot.lane.b32.xlu1 %v3233_v48, %s2924_s2 }
 0x1c8   : > { %1202 = vrot.lane.b32.xlu0 %v3227_v44, %s2924_s2  ;;  %v3444_v44 = vmul.f32 %v886_v33, %v3243_v53  ;;  %v3479_v33 = vrot.slane %v3351_v25, %v1052_v35  ;;  %v1161_v35 = vsel %vm878_vm3, %v3334_v20, 0.0  ;;  %v3514_v20 = vmul.f32 %v1173_v51, %v3322_v17 }
 0x1ca   : > { %4052 = vst [vmem:[#allocation30_spill] sm:$0xff] %v3514_v20 }
 0x1cb   : > { %1200 = vrot.lane.b32.xlu1 %v3243_v53, %s2924_s2  ;;  %v1099_v53 = vsel %vm875_vm2, %v3297_v10, 0.0  ;;  %v3481_v10 = vmul.f32 %v1117_v43, %v1100_v50  ;;  %v3501_v50 = vmul.f32 %v1165_v47, %v3302_v12 }
 0x1cc   : > { %1206 = vrot.lane.b32.xlu0 %v3224_v40, %s2924_s2  ;;  %v3438_v40 = vmul.f32 %v890_v34, %v3233_v48  ;;  %v3455_v48 = vmul.f32 %v1121_v36, %v3273_v2  ;;  %v1159_v2 = vsel %vm878_vm3, %v3317_v16, 0.0  ;;  %v1160_v34 = vsel %vm878_vm3, %v3330_v19, 0.0 }
 0x1cd   : > { %v3490_v62 = vmul.f32 %v1113_v45, %v1099_v53  ;;  %v3493_v16 = vmul.f32 %v1113_v45, %v3287_v5  ;;  %v3504_v19 = vmul.f32 %v1169_v49, %v3306_v13  ;;  %v3508_v53 = vmul.f32 %v1169_v49, %v1159_v2 }
 0x1ce   : > { %v3519_v12 = vmul.f32 %v1173_v51, %v1160_v34  ;;  %v3528_v49 = vrot.slane %v3345_v22, %v3198_v39  ;;  %v3542_v51 = vrot.slane %v3498_v55, %v3195_v38  ;;  %v3546_v34 = vrot.slane %v3498_v55, %v3201_v41 }
 0x1cf   : > { %1208 = vrot.lane.b32.xlu1 %v3246_v56, %s2924_s2  ;;  %v3450_v56 = vmul.f32 %v1117_v43, %v3268_v0  ;;  %v1285_v0 = vsub.s32 5, %v3192_v37  ;;  %4050 = vst [vmem:[#allocation28_spill] sm:$0xff] %v3493_v16  ;;  %v2228_v43 = vld [vmem:[#allocation11] ss:$0 sm:$0xff]  ;;  %v3517_v16 = vmul.f32 %v1177_v57, %v3326_v18  ;;  %v3538_v18 = vrot.slane %v3349_v24, %v3198_v39  ;;  %s3940_s2 = scalar_lea.hbm %s3995_s11, %s2268_s14 }
 0x1d0   : > { %4054 = vst [vmem:[#allocation32_spill] sm:$0xff] %v3519_v12  ;;  %4055 = vst [vmem:[#allocation33_spill] sm:$0xff] %v3528_v49 }
 0x1d1   : > { %4049 = vst [vmem:[#allocation27_spill] sm:$0xff] %v3450_v56  ;;  %v3506_v56 = vmul.f32 %v1165_v47, %v1158_v30  ;;  %v3511_v45 = vrot.slane %v3345_v22, %v1285_v0  ;;  %4053 = vst [vmem:[#allocation31_spill] sm:$0xff] %v3517_v16  ;;  %v3524_v47 = vrot.slane %v3349_v24, %v1285_v0 }
 0x1d2   : > { %v3530_v30 = vmul.f32 %v1177_v57, %v1161_v35  ;;  %4057 = vst [vmem:[#allocation35_spill] sm:$0xff] %v3538_v18  ;;  %4058 = vst [vmem:[#allocation36_spill] sm:$0xff] %v3542_v51  ;;  %v3557_v57 = vadd.s32 384, %v3358_v28  ;;  %v3560_v24 = vrot.slane %v3351_v25, %v1285_v0  ;;  %v3563_v35 = vrot.slane %v3347_v23, %v1285_v0 }
 0x1d3   : > { %1522 = vbcast.lane.b32.xlu1 %v2228_v43, 256  ;;  %4059 = vst [vmem:[#allocation37_spill] sm:$0xff] %v3546_v34  ;;  %v3567_v43 = vrot.slane %v3351_v25, %v3198_v39 }
 0x1d4   : > { %4056 = vst [vmem:[#allocation34_spill] sm:$0xff] %v3530_v30  ;;  %4060 = vst [vmem:[#allocation38_spill] sm:$0xff] %v3560_v24  ;;  %vm874_vm7 = vcmp.lt.s32.totalorder %v3557_v57, 480 }
 0x1d5   : > { %4061 = vst [vmem:[#allocation39_spill] sm:$0xff] %v3563_v35  ;;  %4062 = vst [vmem:[#allocation40_spill] sm:$0xff] %v3567_v43 }
 0x222   : > { %v904_v63 = vpop.permute.xlu0 %903 }
 0x225   : > { %v916_v42 = vpop.permute.xlu1 %915 }
 0x226   : > { %v912_v46 = vpop.permute.xlu0 %911  ;;  %v926_v36 = vsel %vm919_vm4, %v916_v42, %v904_v63 }
 0x227   : > { %v928_v13 = vsel %vm867_vm5, %v926_v36, 0.0  ;;  %v920_v17 = vsel %vm919_vm4, %v912_v46, %v916_v42 }
 0x228   : > { %v936_v36 = vrot.slane %v928_v13, 7  ;;  %v939_v41 = vrot.slane %v920_v17, 7  ;;  %v1012_v38 = vmul.f32 %v3385_v54, %v920_v17  ;;  %v1028_v30 = vrot.slane %v920_v17, 1 }
 0x229   : > { %v3488_v14 = vpop.permute.xlu1 %913 }
 0x22a   : > { %v908_v5 = vpop.permute.xlu0 %907 }
 0x22b   : > { %v3550_v22 = vsel %vm919_vm4, %v908_v5, %v912_v46  ;;  %v3554_v42 = vsel %vm919_vm4, %v904_v63, %v908_v5  ;;  %v3571_v46 = vrot.slane %v3347_v23, %v3198_v39  ;;  %v1009_v63 = vmul.f32 %v3381_v52, %v928_v13 }
 0x22c   : > { %v1025_v5 = vrot.slane %v928_v13, 1  ;;  %v938_v0 = vrot.slane %v3550_v22, 7  ;;  %v3579_v35 = vmul.f32 %v3391_v58, %v3554_v42  ;;  %v3583_v23 = vmul.f32 %v3395_v60, %v3550_v22 }
 0x22d   : > { %v3534_v2 = vpop.permute.xlu1 %1196  ;;  %4063 = vst [vmem:[#allocation41_spill] sm:$0xff] %v3571_v46 }
 0x22e   : > { %v906_v25 = vpop.permute.xlu0 %905 }
 0x231   : > { %v918_v43 = vpop.permute.xlu1 %917 }
 0x232   : > { %v921_v17 = vsel %vm919_vm4, %v3488_v14, %v918_v43  ;;  %v927_v12 = vsel %vm919_vm4, %v918_v43, %v906_v25  ;;  %v3629_v49 = vpop.permute.xlu0 %1194 }
 0x233   : > { %v932_v24 = vsel %vm867_vm5, %v927_v12, 0.0  ;;  %v943_v34 = vrot.slane %v921_v17, 7  ;;  %v1032_v51 = vrot.slane %v921_v17, 1  ;;  %v1016_v16 = vmul.f32 %v3385_v54, %v921_v17 }
 0x234   : > { %v940_v55 = vrot.slane %v932_v24, 7  ;;  %v1013_v39 = vmul.f32 %v3381_v52, %v932_v24  ;;  %v1029_v13 = vrot.slane %v932_v24, 1 }
 0x235   : > { %v948_v20 = vsel %vm944_vm0, %v939_v41, %v943_v34  ;;  %v952_v18 = vsel %vm944_vm0, %v943_v34, %v939_v41  ;;  %v1037_v43 = vsel %vm1033_vm1, %v1028_v30, %v1032_v51  ;;  %v1041_v12 = vsel %vm1033_vm1, %v1032_v51, %v1028_v30 }
 0x236   : > { %v945_v46 = vsel %vm944_vm0, %v936_v36, %v940_v55  ;;  %v949_v52 = vsel %vm944_vm0, %v940_v55, %v936_v36  ;;  %v956_v54 = vsel %vm875_vm2, %v952_v18, 0.0  ;;  %v984_v24 = vmul.f32 %v3406_v1, %v948_v20  ;;  %v910_v36 = vpop.permute.xlu1 %909 }
 0x237   : > { %v953_v41 = vsel %vm875_vm2, %v949_v52, 0.0  ;;  %v980_v34 = vmul.f32 %v3406_v1, %v956_v54  ;;  %v981_v17 = vmul.f32 %v3399_v61, %v945_v46  ;;  %v1034_v30 = vsel %vm1033_vm1, %v1025_v5, %v1029_v13 }
 0x238   : > { %v977_v51 = vmul.f32 %v3399_v61, %v953_v41  ;;  %v992_v55 = vadd.f32 %v984_v24, %v3430_v21  ;;  %v1038_v18 = vsel %vm1033_vm1, %v1029_v13, %v1025_v5  ;;  %v1049_v20 = vsel %vm878_vm3, %v1041_v12, 0.0 }
 0x239   : > { %v988_v1 = vadd.f32 %v980_v34, %v3418_v9  ;;  %v989_v46 = vadd.f32 %v981_v17, %v3433_v27  ;;  %v1046_v52 = vsel %vm878_vm3, %v1038_v18, 0.0  ;;  %v1066_v54 = vmul.f32 %v3409_v6, %v1034_v30  ;;  %v1199_v18 = vpop.permute.xlu0 %1198 }
 0x23a   : > { %v985_v61 = vadd.f32 %v977_v51, %v3415_v8  ;;  %v1024_v21 = vadd.f32 %v1016_v16, %v992_v55  ;;  %v1069_v5 = vmul.f32 %v3412_v7, %v1037_v43  ;;  %v1070_v13 = vmul.f32 %v3409_v6, %v1046_v52 }
 0x23b   : > { %v1020_v12 = vadd.f32 %v1012_v38, %v988_v1  ;;  %v1021_v24 = vadd.f32 %v1013_v39, %v989_v46  ;;  %v1073_v9 = vmul.f32 %v3412_v7, %v1049_v20  ;;  %v923_v27 = vsel %vm919_vm4, %v910_v36, %v3488_v14 }
 0x23c   : > { %v1017_v41 = vadd.f32 %v1009_v63, %v985_v61  ;;  %v925_v34 = vsel %vm919_vm4, %v906_v25, %v910_v36  ;;  %v942_v17 = vrot.slane %v923_v27, 7  ;;  %v1015_v8 = vmul.f32 %v3395_v60, %v923_v27 }
 0x23d   : > { %v1077_v16 = vadd.f32 %v1069_v5, %v1020_v12  ;;  %v1078_v30 = vadd.f32 %v1070_v13, %v1021_v24  ;;  %v1081_v43 = vadd.f32 %v1073_v9, %v1024_v21  ;;  %v941_v51 = vrot.slane %v925_v34, 7  ;;  %v3676_v21 = vpop.permute.xlu1 %1204 }
 0x23e   : > { %v1074_v6 = vadd.f32 %v1066_v54, %v1017_v41  ;;  %v947_v38 = vsel %vm944_vm0, %v938_v0, %v942_v17  ;;  %v951_v39 = vsel %vm944_vm0, %v942_v17, %v938_v0  ;;  %v1014_v7 = vmul.f32 %v3391_v58, %v925_v34 }
 0x23f   : > { %v3647_v14 = vadd.f32 %v3452_v29, %v1077_v16  ;;  %v1134_v63 = vadd.f32 %v3441_v3, %v1078_v30  ;;  %v3651_v60 = vadd.f32 %v3455_v48, %v1081_v43  ;;  %v4064_v25 = vrot.slane %v3554_v42, 7  ;;  %v3702_v16 = vpop.permute.xlu0 %1202 }
 0x240   : > { %v1130_v20 = vadd.f32 %v3435_v32, %v1074_v6  ;;  %v955_v29 = vsel %vm875_vm2, %v951_v39, 0.0  ;;  %v983_v1 = vmul.f32 %v3466_v4, %v947_v38  ;;  %v1030_v46 = vrot.slane %v925_v34, 1 }
 0x241   : > { %v946_v55 = vsel %vm944_vm0, %v4064_v25, %v941_v51  ;;  %v4065_v0 = vmov %v4064_v25  ;;  %v979_v36 = vmul.f32 %v3466_v4, %v955_v29  ;;  %v1031_v54 = vrot.slane %v923_v27, 1 }
 0x242   : > { %v950_v58 = vsel %vm944_vm0, %v941_v51, %v4065_v0  ;;  %v982_v3 = vmul.f32 %v3459_v59, %v946_v55  ;;  %v3674_v61 = vsel %vm1210_vm6, %v3629_v49, %v1199_v18  ;;  %v991_v13 = vadd.f32 %v983_v1, %v3438_v40  ;;  %v1201_v55 = vpop.permute.xlu1 %1200 }
 0x243   : > { %v954_v48 = vsel %vm875_vm2, %v950_v58, 0.0  ;;  %v987_v5 = vadd.f32 %v979_v36, %v3424_v11  ;;  %v4066_v12 = vrot.slane %v3554_v42, 1  ;;  %v4068_v27 = vrot.slane %v3550_v22, 1 }
 0x244   : > { %v978_v32 = vmul.f32 %v3459_v59, %v954_v48  ;;  %v990_v52 = vadd.f32 %v982_v3, %v3444_v44  ;;  %v1023_v17 = vadd.f32 %v1015_v8, %v991_v13  ;;  %v1299_v8 = vmul.f32 %v3511_v45, %v3674_v61  ;;  %v4070_v48 = vld [vmem:[#allocation28_spill] sm:$0xff] }
 0x245   : > { %v1035_v4 = vsel %vm1033_vm1, %v4066_v12, %v1030_v46  ;;  %v4067_v59 = vmov %v4066_v12  ;;  %v1036_v11 = vsel %vm1033_vm1, %v4068_v27, %v1031_v54  ;;  %v4069_v40 = vmov %v4068_v27  ;;  %v2225_v27 = vld [vmem:[#allocation8 + $0x28] ss:$0 sm:$0xff] }
 0x246   : > { %v1039_v44 = vsel %vm1033_vm1, %v1030_v46, %v4067_v59  ;;  %v986_v24 = vadd.f32 %v978_v32, %v3427_v15  ;;  %v1022_v9 = vadd.f32 %v1014_v7, %v990_v52  ;;  %v1040_v41 = vsel %vm1033_vm1, %v1031_v54, %v4069_v40  ;;  %v4071_v46 = vld [vmem:[#allocation27_spill] sm:$0xff] }
 0x247   : > { %v1019_v34 = vadd.f32 %v3583_v23, %v987_v5  ;;  %v1047_v42 = vsel %vm878_vm3, %v1039_v44, 0.0  ;;  %v1048_v15 = vsel %vm878_vm3, %v1040_v41, 0.0  ;;  %v1067_v43 = vmul.f32 %v3476_v31, %v1035_v4  ;;  %v4073_v44 = vld [vmem:[#allocation35_spill] sm:$0xff] }
 0x248   : > { %v1018_v30 = vadd.f32 %v3579_v35, %v986_v24  ;;  %v1068_v22 = vmul.f32 %v3479_v33, %v1036_v11  ;;  %v1071_v51 = vmul.f32 %v3476_v31, %v1047_v42  ;;  %v1072_v6 = vmul.f32 %v3479_v33, %v1048_v15 }
 0x249   : > { %v1227_v23 = vrot.slane %v3674_v61, 7  ;;  %v1315_v38 = vrot.slane %v3674_v61, 1  ;;  %v1213_v35 = vsel %vm1210_vm6, %v1199_v18, %v3702_v16  ;;  %v1186_v1 = vadd.f32 %v3501_v50, %v1130_v20 }
 0x24a   : > { %v1075_v39 = vadd.f32 %v1067_v43, %v1018_v30  ;;  %v1076_v7 = vadd.f32 %v1068_v22, %v1019_v34  ;;  %v1079_v25 = vadd.f32 %v1071_v51, %v1022_v9  ;;  %v1080_v0 = vadd.f32 %v1072_v6, %v1023_v17  ;;  %v2224_v9 = vld [vmem:[#allocation8 + $0x20] ss:$0 sm:$0xff] }
 0x24b   : > { %v1228_v58 = vrot.slane %v1213_v35, 7  ;;  %v1300_v31 = vmul.f32 %v3524_v47, %v1213_v35  ;;  %v1316_v33 = vrot.slane %v1213_v35, 1  ;;  %v1190_v52 = vadd.f32 %v3506_v56, %v1134_v63 }
 0x24c   : > { %v1131_v29 = vadd.f32 %v3490_v62, %v1075_v39  ;;  %v1132_v3 = vadd.f32 %v3481_v10, %v1076_v7  ;;  %v1135_v36 = vadd.f32 %v4070_v48, %v1079_v25  ;;  %v3722_v32 = vadd.f32 %v4071_v46, %v1080_v0  ;;  %v4074_v48 = vld [vmem:[#allocation30_spill] sm:$0xff] }
 0x24d   : > { %v1214_v18 = vsel %vm1210_vm6, %v1201_v55, %v3676_v21  ;;  %v1216_v54 = vsel %vm1210_vm6, %v3534_v2, %v1201_v55 }
 0x24e   : > { %v1187_v62 = vadd.f32 %v3504_v19, %v1131_v29  ;;  %v1191_v10 = vadd.f32 %v3508_v53, %v1135_v36  ;;  %v1231_v61 = vrot.slane %v1216_v54, 7  ;;  %v1232_v5 = vrot.slane %v1214_v18, 7 }
 0x24f   : > { %v1303_v50 = vmul.f32 %v3511_v45, %v1216_v54  ;;  %v1304_v56 = vmul.f32 %v3524_v47, %v1214_v18  ;;  %v1319_v63 = vrot.slane %v1216_v54, 1  ;;  %v1320_v20 = vrot.slane %v1214_v18, 1  ;;  %v4072_v47 = vld [vmem:[#allocation33_spill] sm:$0xff] }
 0x250   : > { %v1235_v13 = vsel %vm944_vm0, %v1227_v23, %v1231_v61  ;;  %v1236_v12 = vsel %vm944_vm0, %v1228_v58, %v1232_v5  ;;  %v1239_v19 = vsel %vm944_vm0, %v1231_v61, %v1227_v23  ;;  %v1240_v53 = vsel %vm944_vm0, %v1232_v5, %v1228_v58  ;;  %v1207_v23 = vpop.permute.xlu0 %1206  ;;  %v4077_v61 = vld [vmem:[#allocation29_spill] sm:$0xff]  ;;  %v4078_v5 = vld [vmem:[#allocation26_spill] sm:$0xff] }
 0x251   : > { %v1243_v4 = vsel %vm875_vm2, %v1239_v19, 0.0  ;;  %v1244_v45 = vsel %vm875_vm2, %v1240_v53, 0.0  ;;  %v1271_v59 = vmul.f32 %v4072_v47, %v1235_v13  ;;  %v1272_v24 = vmul.f32 %v4073_v44, %v1236_v12  ;;  %v1209_v13 = vpop.permute.xlu1 %1208  ;;  %v4081_v19 = vld [vmem:[#allocation38_spill] sm:$0xff] }
 0x252   : > { %v1267_v11 = vmul.f32 %v4072_v47, %v1243_v4  ;;  %v1268_v40 = vmul.f32 %v4073_v44, %v1244_v45  ;;  %v1323_v41 = vsel %vm1033_vm1, %v1315_v38, %v1319_v63  ;;  %v1324_v34 = vsel %vm1033_vm1, %v1316_v33, %v1320_v20  ;;  %v4082_v45 = vld [vmem:[#allocation32_spill] sm:$0xff] }
 0x253   : > { %v1279_v17 = vadd.f32 %v1271_v59, %v1190_v52  ;;  %v1280_v42 = vadd.f32 %v1272_v24, %v1191_v10  ;;  %v1327_v15 = vsel %vm1033_vm1, %v1319_v63, %v1315_v38  ;;  %v1328_v30 = vsel %vm1033_vm1, %v1320_v20, %v1316_v33  ;;  %v4076_v10 = vld [vmem:[#allocation24_spill] sm:$0xff] }
 0x254   : > { %v1275_v43 = vadd.f32 %v1267_v11, %v1186_v1  ;;  %v1276_v22 = vadd.f32 %v1268_v40, %v1187_v62  ;;  %v1335_v51 = vsel %vm878_vm3, %v1327_v15, 0.0  ;;  %v1336_v6 = vsel %vm878_vm3, %v1328_v30, 0.0  ;;  %v4075_v1 = vld [vmem:[#allocation31_spill] sm:$0xff]  ;;  %v4083_v11 = vld [vmem:[#allocation34_spill] sm:$0xff] }
 0x255   : > { %v1311_v39 = vadd.f32 %v1303_v50, %v1279_v17  ;;  %v1312_v7 = vadd.f32 %v1304_v56, %v1280_v42  ;;  %v1355_v25 = vmul.f32 %v2224_v9, %v1323_v41  ;;  %v1356_v35 = vmul.f32 %v2225_v27, %v1324_v34  ;;  %v4084_v15 = vld [vmem:[#allocation39_spill] sm:$0xff] }
 0x256   : > { %v1307_v55 = vadd.f32 %v1299_v8, %v1275_v43  ;;  %v1308_v0 = vadd.f32 %v1300_v31, %v1276_v22  ;;  %v1359_v58 = vmul.f32 %v2224_v9, %v1335_v51  ;;  %v1360_v38 = vmul.f32 %v2225_v27, %v1336_v6 }
 0x257   : > { %v1211_v33 = vsel %vm1210_vm6, %v3702_v16, %v1207_v23  ;;  %v1217_v29 = vsel %vm1210_vm6, %v1207_v23, %v3629_v49  ;;  %v1188_v36 = vadd.f32 %v4074_v48, %v1132_v3  ;;  %v1189_v46 = vadd.f32 %v4075_v1, %v3647_v14  ;;  %v4079_v3 = vld [vmem:[#allocation36_spill] sm:$0xff]  ;;  %v4080_v14 = vld [vmem:[#allocation37_spill] sm:$0xff] }
 0x258   : > { %v1363_v52 = vadd.f32 %v1355_v25, %v1307_v55  ;;  %v1364_v18 = vadd.f32 %v1356_v35, %v1308_v0  ;;  %v1367_v54 = vadd.f32 %v1359_v58, %v1311_v39  ;;  %v1368_v8 = vadd.f32 %v1360_v38, %v1312_v7  ;;  %v4085_v55 = vld [vmem:[#allocation40_spill] sm:$0xff]  ;;  %v2226_v38 = vld [vmem:[#allocation8 + $0x30] ss:$0 sm:$0xff] }
 0x259   : > { %v1222_v31 = vsel %vm874_vm7, %v1217_v29, 0.0  ;;  %v1229_v62 = vrot.slane %v1211_v33, 7  ;;  %v3777_v16 = vrot.slane %v4077_v61, %v4076_v10  ;;  %v3781_v49 = vrot.slane %v4077_v61, %v4078_v5 }
 0x25a   : > { %v3784_v50 = vadd.f32 %v4079_v3, %v1363_v52  ;;  %v3787_v56 = vadd.f32 %v4080_v14, %v1364_v18  ;;  %v3790_v63 = vadd.f32 %v4079_v3, %v1367_v54  ;;  %v3793_v20 = vadd.f32 %v4080_v14, %v1368_v8  ;;  %v2227_v18 = vld [vmem:[#allocation8 + $0x38] ss:$0 sm:$0xff] }
 0x25b   : > { %v1230_v12 = vrot.slane %v1222_v31, 7  ;;  %v1301_v53 = vmul.f32 %v4081_v19, %v1211_v33  ;;  %v1317_v4 = vrot.slane %v1211_v33, 1  ;;  %v1192_v47 = vadd.f32 %v4082_v45, %v3722_v32  ;;  %v4086_v33 = vld [vmem:[#allocation41_spill] sm:$0xff] }
 0x25c   : > { %v1401_v59 = vsub.f32 0.0, %v3784_v50  ;;  %v1402_v44 = vsub.f32 0.0, %v3787_v56  ;;  %v1405_v24 = vsub.f32 0.0, %v3790_v63  ;;  %v1406_v9 = vsub.f32 0.0, %v3793_v20 }
 0x25d   : > { %v1318_v27 = vrot.slane %v1222_v31, 1  ;;  %v1193_v40 = vadd.f32 %v4083_v11, %v3651_v60  ;;  %v1212_v41 = vsel %vm1210_vm6, %v3676_v21, %v1209_v13  ;;  %v1218_v32 = vsel %vm1210_vm6, %v1209_v13, %v3534_v2 }
 0x25e   : > { %v1409_v34 = vmul.f32 1.442695, %v1401_v59  ;;  %v1411_v17 = vmul.f32 1.442695, %v1402_v44  ;;  %v1417_v42 = vmul.f32 1.442695, %v1405_v24  ;;  %v1302_v30 = vmul.f32 %v4084_v15, %v1222_v31 }
 0x25f   : > { %v1419_v43 = vmul.f32 1.442695, %v1406_v9  ;;  %v1226_v22 = vsel %vm874_vm7, %v1218_v32, 0.0  ;;  %v1233_v51 = vrot.slane %v1212_v41, 7  ;;  %v1321_v6 = vrot.slane %v1212_v41, 1 }
 0x260   : > { %2560 = vpow2.f32 %v1409_v34  ;;  %v1234_v60 = vrot.slane %v1226_v22, 7  ;;  %v1305_v23 = vmul.f32 %v4081_v19, %v1212_v41  ;;  %v1322_v21 = vrot.slane %v1226_v22, 1 }
 0x261   : > { %2562 = vpow2.f32 %v1411_v17  ;;  %v1237_v28 = vsel %vm944_vm0, %v1229_v62, %v1233_v51  ;;  %v1241_v2 = vsel %vm944_vm0, %v1233_v51, %v1229_v62  ;;  %v1325_v39 = vsel %vm1033_vm1, %v1317_v4, %v1321_v6 }
 0x262   : > { %2564 = vpow2.f32 %v1417_v42  ;;  %v1238_v57 = vsel %vm944_vm0, %v1230_v12, %v1234_v60  ;;  %v1242_v7 = vsel %vm944_vm0, %v1234_v60, %v1230_v12  ;;  %v1245_v25 = vsel %vm875_vm2, %v1241_v2, 0.0 }
 0x263   : > { %2566 = vpow2.f32 %v1419_v43  ;;  %v1246_v35 = vsel %vm875_vm2, %v1242_v7, 0.0  ;;  %v1269_v0 = vmul.f32 %v4085_v55, %v1245_v25  ;;  %v1273_v58 = vmul.f32 %v4085_v55, %v1237_v28 }
 0x264   : > { %v1270_v29 = vmul.f32 %v4086_v33, %v1246_v35  ;;  %v1274_v48 = vmul.f32 %v4086_v33, %v1238_v57  ;;  %v1326_v1 = vsel %vm1033_vm1, %v1318_v27, %v1322_v21  ;;  %v1329_v52 = vsel %vm1033_vm1, %v1321_v6, %v1317_v4 }
 0x265   : > { %v1277_v54 = vadd.f32 %v1269_v0, %v1188_v36  ;;  %v1281_v8 = vadd.f32 %v1273_v58, %v1192_v47  ;;  %v1330_v31 = vsel %vm1033_vm1, %v1322_v21, %v1318_v27  ;;  %v1337_v62 = vsel %vm878_vm3, %v1329_v52, 0.0 }
 0x266   : > { %v1278_v61 = vadd.f32 %v1270_v29, %v1189_v46  ;;  %v1282_v3 = vadd.f32 %v1274_v48, %v1193_v40  ;;  %v1306_v14 = vmul.f32 %v4084_v15, %v1226_v22  ;;  %v1338_v13 = vsel %vm878_vm3, %v1330_v31, 0.0 }
 0x267   : > { %v1309_v12 = vadd.f32 %v1301_v53, %v1277_v54  ;;  %v1313_v19 = vadd.f32 %v1305_v23, %v1281_v8  ;;  %v1357_v45 = vmul.f32 %v2226_v38, %v1325_v39  ;;  %v1361_v4 = vmul.f32 %v2226_v38, %v1337_v62 }
 0x268   : > { %v1310_v59 = vadd.f32 %v1302_v30, %v1278_v61  ;;  %v1314_v36 = vadd.f32 %v1306_v14, %v1282_v3  ;;  %v1358_v47 = vmul.f32 %v2227_v18, %v1326_v1  ;;  %v1362_v44 = vmul.f32 %v2227_v18, %v1338_v13 }
 0x269   : > { %v1365_v24 = vadd.f32 %v1357_v45, %v1309_v12  ;;  %v1369_v9 = vadd.f32 %v1361_v4, %v1313_v19  ;;  %v2925_v54 = vmov 1983009808   ;;  %v1477_v19 = vld [vmem:[%s3989_s5] sm:$0xff] }
 0x26a   : > { %v1366_v27 = vadd.f32 %v1358_v47, %v1310_v59  ;;  %v1370_v11 = vadd.f32 %v1362_v44, %v1314_v36  ;;  %v1481_v8 = vunpack.c.l.s4 %v2925_v54 }
 0x26b   : > { %v3844_v46 = vadd.f32 %v3777_v16, %v1365_v24  ;;  %v3847_v40 = vadd.f32 %v3777_v16, %v1369_v9 }
 0x26c   : > { %v3850_v26 = vadd.f32 %v3781_v49, %v1366_v27  ;;  %v3853_v53 = vadd.f32 %v3781_v49, %v1370_v11  ;;  %v1482_v61 = vunpack.c.0.s8 %v1481_v8 }
 0x26d   : > { %v2561_v41 = vpop.eup %2560  ;;  %v1403_v32 = vsub.f32 0.0, %v3844_v46  ;;  %v1407_v15 = vsub.f32 0.0, %v3847_v40 }
 0x26e   : > { %v2563_v34 = vpop.eup %2562  ;;  %v1425_v17 = vadd.f32 1.0, %v2561_v41  ;;  %v1404_v42 = vsub.f32 0.0, %v3850_v26  ;;  %v1408_v16 = vsub.f32 0.0, %v3853_v53  ;;  %v3876_v13 = vsub.s32 %v1482_v61, %v3192_v37  ;;  %v2496_v61 = vld [vmem:[#allocation14 + $0x78] sm:$0xff]  }
 0x26f   : > { %v2565_v30 = vpop.eup %2564  ;;  %v1426_v43 = vadd.f32 1.0, %v2563_v34  ;;  %v1413_v6 = vmul.f32 1.442695, %v1403_v32  ;;  %v1421_v23 = vmul.f32 1.442695, %v1407_v15  ;;  %2269 = vmatprep.subr.bf16.mxu0 %v2496_v61 }
 0x270   : > { %v2567_v22 = vpop.eup %2566  ;;  %v1429_v51 = vadd.f32 1.0, %v2565_v30  ;;  %2568 = vrcp.f32 %v1425_v17  ;;  %v1415_v49 = vmul.f32 1.442695, %v1404_v42  ;;  %v1423_v21 = vmul.f32 1.442695, %v1408_v16 }
 0x271   : > { %v1430_v60 = vadd.f32 1.0, %v2567_v22  ;;  %2570 = vrcp.f32 %v1426_v43  ;;  %v1486_v9 = vrot.slane %v1477_v19, %v3876_v13  ;;  %v1479_v42 = vcombine.high %v1477_v19, %v1477_v19  ;;  %v2500_v19 = vld [vmem:[#allocation14 + $0x70] sm:$0xff]  }
 0x272   : > { %2572 = vrcp.f32 %v1429_v51 }
 0x273   : > { %2574 = vrcp.f32 %v1430_v60  ;;  %v1494_v34 = vcombine.high %v1486_v9, %v1486_v9 }
 0x274   : > { %2576 = vpow2.f32 %v1413_v6 }
 0x275   : > { %2578 = vpow2.f32 %v1415_v49 }
 0x276   : > { %2580 = vpow2.f32 %v1421_v23 }
 0x277   : > { %2582 = vpow2.f32 %v1423_v21 }
 0x27d   : > { %v2569_v28 = vpop.eup %2568 }
 0x27e   : > { %v2571_v2 = vpop.eup %2570  ;;  %v3860_v39 = vmul.f32 %v2569_v28, %v3784_v50 }
 0x27f   : > { %v2573_v57 = vpop.eup %2572  ;;  %v3863_v7 = vmul.f32 %v2571_v2, %v3787_v56 }
 0x280   : > { %v2575_v25 = vpop.eup %2574  ;;  %v3866_v35 = vmul.f32 %v2573_v57, %v3790_v63 }
 0x281   : > { %v2577_v55 = vpop.eup %2576  ;;  %v3869_v0 = vmul.f32 %v2575_v25, %v3793_v20 }
 0x282   : > { %v2579_v58 = vpop.eup %2578  ;;  %v1449_v38 = vadd.f32 %v3866_v35, %v3860_v39  ;;  %v1427_v33 = vadd.f32 1.0, %v2577_v55 }
 0x283   : > { %v2581_v29 = vpop.eup %2580  ;;  %v1456_v50 = vadd.f32 %v3869_v0, %v3863_v7  ;;  %v1428_v48 = vadd.f32 1.0, %v2579_v58 }
 0x284   : > { %v2583_v56 = vpop.eup %2582  ;;  %v1431_v1 = vadd.f32 1.0, %v2581_v29  ;;  %2584 = vrcp.f32 %v1427_v33  ;;  %v1450_v18 = vrot.slane %v1449_v38, 4 }
 0x285   : > { %v1457_v52 = vrot.slane %v1456_v50, 4  ;;  %v1432_v63 = vadd.f32 1.0, %v2583_v56  ;;  %2586 = vrcp.f32 %v1428_v48 }
 0x286   : > { %2588 = vrcp.f32 %v1431_v1  ;;  %v1451_v31 = vadd.f32 %v1450_v18, %v1449_v38  ;;  %v1523_v1 = vpop.permute.xlu1 %1522 }
 0x287   : > { %2590 = vrcp.f32 %v1432_v63  ;;  %v1458_v20 = vadd.f32 %v1457_v52, %v1456_v50 }
 0x288   : > { %v1452_v3 = vrot.slane %v1451_v31, 2 }
 0x289   : > { %v1459_v62 = vrot.slane %v1458_v20, 2 }
 0x28a   : > { %v1453_v59 = vadd.f32 %v1452_v3, %v1451_v31  ;;  %v2497_v3 = vld [vmem:[#allocation14 + $0xf8] sm:$0xff]  }
 0x28b   : > { %v1460_v14 = vadd.f32 %v1459_v62, %v1458_v20  ;;  %2291 = vmatprep.subr.bf16.mxu1 %v2497_v3  ;;  %v1592_v3 = vld [vmem:[%s3992_s8] sm:$0xf] }
 0x28d   : > { %v1461_v37 = vrot.slane %v1460_v14, 1 }
 0x28f   : > { %v1462_v32 = vadd.f32 %v1461_v37, %v1460_v14  ;;  %v2498_v14 = vld [vmem:[#allocation14 + $0x38] sm:$0xff]   ;;  %v2505_v37 = vld [vmem:[#allocation14 + $0xe8] sm:$0xff]  }
 0x290   : > { %2270 = vmatpush3.bf16.msra.mxu0 %v2498_v14 }
 0x291   : > { %v2585_v12 = vpop.eup %2584  ;;  %v1501_v16 = vmul.f32 %v1494_v34, %v1462_v32  ;;  %2271 = vmatprep.subr.bf16.mxu0 %v2500_v19  ;;  %v2510_v32 = vld [vmem:[#allocation14 + $0x20] sm:$0xff]   ;;  %v2512_v34 = vld [vmem:[#allocation14 + $0x58] sm:$0xff]  }
 0x292   : > { %v2587_v45 = vpop.eup %2586  ;;  %v3882_v4 = vmul.f32 %v2585_v12, %v3844_v46  ;;  %v1454_v46 = vrot.slane %v1453_v59, 1  ;;  %v2499_v12 = vld [vmem:[#allocation14 + $0xb8] sm:$0xff]  }
 0x293   : > { %v2589_v36 = vpop.eup %2588  ;;  %v3885_v47 = vmul.f32 %v2587_v45, %v3850_v26  ;;  %v1506_v23 = vsel %vm1504_vm8, %v1501_v16, 0.0  ;;  %2292 = vmatpush3.bf16.msra.mxu1 %v2499_v12  ;;  %v2501_v45 = vld [vmem:[#allocation14 + $0xf0] sm:$0xff]  }
 0x294   : > { %v2591_v44 = vpop.eup %2590  ;;  %v3888_v24 = vmul.f32 %v2589_v36, %v3847_v40  ;;  %v1455_v40 = vadd.f32 %v1454_v46, %v1453_v59  ;;  %v2502_v59 = vld [vmem:[#allocation14 + $0x30] sm:$0xff]   ;;  %2293 = vmatprep.subr.bf16.mxu1 %v2501_v45  ;;  %v2508_v46 = vld [vmem:[#allocation14 + $0x60] sm:$0xff]  }
 0x295   : > { %v3892_v27 = vmul.f32 %v2591_v44, %v3853_v53  ;;  %v1493_v53 = vrot.slane %v1479_v42, %v3876_v13  ;;  %v2503_v36 = vld [vmem:[#allocation14 + $0xb0] sm:$0xff]   ;;  %2272 = vmatpush3.bf16.msra.mxu0 %v2502_v59  ;;  %v2504_v44 = vld [vmem:[#allocation14 + $0x68] sm:$0xff]   ;;  %v2514_v42 = vld [vmem:[#allocation14 + $0x18] sm:$0xff]  }
 0x296   : > { %v1463_v11 = vadd.f32 %v3888_v24, %v3882_v4  ;;  %v1500_v6 = vmul.f32 %v1486_v9, %v1455_v40  ;;  %v2506_v9 = vld [vmem:[#allocation14 + $0x28] sm:$0xff]   ;;  %2273 = vmatprep.subr.bf16.mxu0 %v2504_v44  ;;  %v2515_v40 = vld [vmem:[#allocation14 + $0x98] sm:$0xff]   ;;  %v2519_v16 = vld [vmem:[#allocation14 + $0x90] sm:$0xff]  }
 0x297   : > { %v1470_v41 = vadd.f32 %v3892_v27, %v3885_v47  ;;  %v1495_v28 = vcombine.high %v1493_v53, %v1493_v53  ;;  %2294 = vmatpush3.bf16.msra.mxu1 %v2503_v36 }
 0x298   : > { %v1464_v26 = vrot.slane %v1463_v11, 4  ;;  %v1505_v57 = vsel %vm1504_vm8, %v1500_v6, 0.0  ;;  %2295 = vmatprep.subr.bf16.mxu1 %v2505_v37  ;;  %v2523_v6 = vld [vmem:[#allocation14 + $0x88] sm:$0xff]  }
 0x299   : > { %v1471_v17 = vrot.slane %v1470_v41, 4  ;;  %v1507_v55 = vadd.f32 %v1506_v23, %v1505_v57  ;;  %2274 = vmatpush3.bf16.msra.mxu0 %v2506_v9  ;;  %v2526_v23 = vld [vmem:[#allocation14] sm:$0xff]  }
 0x29a   : > { %v1465_v15 = vadd.f32 %v1464_v26, %v1463_v11  ;;  %v2507_v11 = vld [vmem:[#allocation14 + $0xa8] sm:$0xff]   ;;  %v2511_v26 = vld [vmem:[#allocation14 + $0xa0] sm:$0xff]   ;;  %2275 = vmatprep.subr.bf16.mxu0 %v2508_v46  ;;  %v4088_v46 = vld [vmem:[#allocation25_spill] sm:$0xff] }
 0x29b   : > { %v1472_v30 = vadd.f32 %v1471_v17, %v1470_v41  ;;  %2296 = vmatpush3.bf16.msra.mxu1 %v2507_v11  ;;  %v2509_v41 = vld [vmem:[#allocation14 + $0xe0] sm:$0xff]   ;;  %v2513_v17 = vld [vmem:[#allocation14 + $0xd8] sm:$0xff]  }
 0x29c   : > { %v1466_v43 = vrot.slane %v1465_v15, 2  ;;  %2297 = vmatprep.subr.bf16.mxu1 %v2509_v41  ;;  %v4087_v9 = vld [vmem:[#allocation23_spill] sm:$0xff]  ;;  %v1601_v41 = vrot.slane %v1592_v3, %v4088_v46 }
 0x29d   : > { %v1473_v22 = vrot.slane %v1472_v30, 2  ;;  %2276 = vmatpush3.bf16.msra.mxu0 %v2510_v32  ;;  %v1597_v11 = vrot.slane %v1592_v3, %v4087_v9  ;;  %v1605_v32 = vrot.slane %v1592_v3, %v4076_v10 }
 0x29e   : > { %v1467_v51 = vadd.f32 %v1466_v43, %v1465_v15  ;;  %2277 = vmatprep.subr.bf16.mxu0 %v2512_v34  ;;  %v2516_v15 = vld [vmem:[#allocation14 + $0x50] sm:$0xff]  }
 0x29f   : > { %v1474_v60 = vadd.f32 %v1473_v22, %v1472_v30  ;;  %2298 = vmatpush3.bf16.msra.mxu1 %v2511_v26  ;;  %v2517_v30 = vld [vmem:[#allocation14 + $0xd0] sm:$0xff]   ;;  %v2520_v22 = vld [vmem:[#allocation14 + $0x48] sm:$0xff]   ;;  %v1609_v26 = vrot.slane %v1592_v3, %v4078_v5 }
 0x2a0   : > { %v1468_v49 = vrot.slane %v1467_v51, 1  ;;  %2299 = vmatprep.subr.bf16.mxu1 %v2513_v17  ;;  %v2518_v43 = vld [vmem:[#allocation14 + $0x10] sm:$0xff]  }
 0x2a1   : > { %v1475_v21 = vrot.slane %v1474_v60, 1  ;;  %2278 = vmatpush3.bf16.msra.mxu0 %v2514_v42 }
 0x2a2   : > { %v1469_v2 = vadd.f32 %v1468_v49, %v1467_v51  ;;  %2279 = vmatprep.subr.bf16.mxu0 %v2516_v15  ;;  %v2522_v51 = vld [vmem:[#allocation14 + $0x8] sm:$0xff]   ;;  %v2525_v49 = vld [vmem:[#allocation14 + $0xc0] sm:$0xff]  }
 0x2a3   : > { %v1476_v25 = vadd.f32 %v1475_v21, %v1474_v60  ;;  %2300 = vmatpush3.bf16.msra.mxu1 %v2515_v40  ;;  %v2524_v60 = vld [vmem:[#allocation14 + $0x40] sm:$0xff]  }
 0x2a4   : > { %v1502_v58 = vmul.f32 %v1493_v53, %v1469_v2  ;;  %2301 = vmatprep.subr.bf16.mxu1 %v2517_v30  ;;  %v2521_v53 = vld [vmem:[#allocation14 + $0xc8] sm:$0xff]   ;;  %v2527_v21 = vld [vmem:[#allocation14 + $0x80] sm:$0xff]  }
 0x2a5   : > { %v1503_v38 = vmul.f32 %v1495_v28, %v1476_v25  ;;  %2280 = vmatpush3.bf16.msra.mxu0 %v2518_v43  ;;  %v1532_v28 = vld [vmem:[#allocation13] sm:$0xff] }
 0x2a6   : > { %v1508_v33 = vsel %vm1504_vm8, %v1502_v58, 0.0  ;;  %2281 = vmatprep.subr.bf16.mxu0 %v2520_v22  ;;  %v1539_v2 = vcombine.high %v1532_v28, %v1532_v28  ;;  %v1546_v57 = vrot.slane %v1532_v28, %v3876_v13 }
 0x2a7   : > { %v1509_v29 = vadd.f32 %v1508_v33, %v1507_v55  ;;  %v1510_v50 = vsel %vm1504_vm8, %v1503_v38, 0.0  ;;  %2302 = vmatpush3.bf16.msra.mxu1 %v2519_v16 }
 0x2a8   : > { %2303 = vmatprep.subr.bf16.mxu1 %v2521_v53  ;;  %v1553_v25 = vrot.slane %v1539_v2, %v3876_v13  ;;  %v1554_v55 = vcombine.high %v1546_v57, %v1546_v57 }
 0x2a9   : > { %v1511_v48 = vadd.f32 %v1510_v50, %v1509_v29  ;;  %2282 = vmatpush3.bf16.msra.mxu0 %v2522_v51 }
 0x2aa   : > { %2283 = vmatprep.subr.bf16.mxu0 %v2524_v60  ;;  %v1555_v58 = vcombine.high %v1553_v25, %v1553_v25 }
 0x2ab   : > { %1512 = vadd.xlane.f32.xlu0 %v1511_v48  ;;  %2304 = vmatpush3.bf16.msra.mxu1 %v2523_v6 }
 0x2ac   : > { %2305 = vmatprep.subr.bf16.mxu1 %v2525_v49 }
 0x2ad   : > { %2284 = vmatpush3.bf16.msra.mxu0 %v2526_v23 }
 0x2af   : > { %2306 = vmatpush3.bf16.msra.mxu1 %v2527_v21 }
 0x334   : > { %v1513_v56 = vpop.xlane.xlu0 %1512 }
 0x335   : > { %v1514_v52 = vmul.f32 0.00390625, %v1513_v56 }
 0x337   : > { %v1525_v63 = vadd.f32 %v1523_v1, %v1514_v52 }
 0x339   : > { %v1526_v18 = vsub.f32 0.0, %v1525_v63 }
 0x33b   : > { %v1527_v20 = vmul.f32 1.442695, %v1526_v18 }
 0x33d   : > { %2592 = vpow2.f32 %v1527_v20 }
 0x34a   : > { %v2593_v54 = vpop.eup %2592 }
 0x34b   : > { %v1529_v8 = vadd.f32 1.0, %v2593_v54 }
 0x34d   : > { %2594 = vrcp.f32 %v1529_v8 }
 0x35a   : > { %v2595_v31 = vpop.eup %2594 }
 0x35b   : > { %v1531_v62 = vmul.f32 %v2595_v31, %v1525_v63 }
 0x35d   : > { %1535 = vperm.xlu1 %2444, %v1531_v62  }
 0x3d8   : > { %v1536_v38 = vpop.permute.xlu1 %1535 }
 0x3d9   : > { %v1560_v33 = vmul.f32 %v1546_v57, %v1536_v38  ;;  %v1561_v29 = vmul.f32 %v1554_v55, %v1536_v38  ;;  %v1562_v50 = vmul.f32 %v1553_v25, %v1536_v38  ;;  %v1563_v48 = vmul.f32 %v1555_v58, %v1536_v38 }
 0x3db   : > { %v1564_v56 = vsel %vm1504_vm8, %v1560_v33, 0.0  ;;  %v1571_v1 = vsel %vm1504_vm8, %v1561_v29, 0.0  ;;  %v1578_v52 = vsel %vm1504_vm8, %v1562_v50, 0.0  ;;  %v1585_v63 = vsel %vm1504_vm8, %v1563_v48, 0.0 }
 0x3dc   : > { %v1565_v18 = vrot.slane %v1564_v56, 4  ;;  %v1572_v20 = vrot.slane %v1571_v1, 4  ;;  %v1579_v54 = vrot.slane %v1578_v52, 4  ;;  %v1586_v8 = vrot.slane %v1585_v63, 4 }
 0x3de   : > { %v1566_v13 = vadd.f32 %v1565_v18, %v1564_v56  ;;  %v1573_v31 = vadd.f32 %v1572_v20, %v1571_v1  ;;  %v1580_v62 = vadd.f32 %v1579_v54, %v1578_v52  ;;  %v1587_v61 = vadd.f32 %v1586_v8, %v1585_v63 }
 0x3e0   : > { %v1567_v14 = vrot.slane %v1566_v13, 2  ;;  %v1574_v12 = vrot.slane %v1573_v31, 2  ;;  %v1581_v19 = vrot.slane %v1580_v62, 2  ;;  %v1588_v45 = vrot.slane %v1587_v61, 2 }
 0x3e2   : > { %v1568_v59 = vadd.f32 %v1567_v14, %v1566_v13  ;;  %v1575_v36 = vadd.f32 %v1574_v12, %v1573_v31  ;;  %v1582_v44 = vadd.f32 %v1581_v19, %v1580_v62  ;;  %v1589_v37 = vadd.f32 %v1588_v45, %v1587_v61 }
 0x3e4   : > { %v1569_v34 = vrot.slane %v1568_v59, 1  ;;  %v1576_v17 = vrot.slane %v1575_v36, 1  ;;  %v1583_v42 = vrot.slane %v1582_v44, 1  ;;  %v1590_v40 = vrot.slane %v1589_v37, 1 }
 0x3e6   : > { %v1570_v15 = vadd.f32 %v1569_v34, %v1568_v59  ;;  %v1577_v30 = vadd.f32 %v1576_v17, %v1575_v36  ;;  %v1584_v43 = vadd.f32 %v1583_v42, %v1582_v44  ;;  %v1591_v16 = vadd.f32 %v1590_v40, %v1589_v37  ;;  %v2613_v40 = vld [vmem:[%s3167_s15 + $0x8] sm:$0xff] }
 0x3e8   : > { %v1614_v22 = vadd.f32 %v1597_v11, %v1570_v15  ;;  %v1615_v53 = vadd.f32 %v1601_v41, %v1577_v30  ;;  %v1616_v51 = vadd.f32 %v1605_v32, %v1584_v43  ;;  %v1617_v6 = vadd.f32 %v1609_v26, %v1591_v16  ;;  %v2612_v32 = vld [vmem:[%s3167_s15] sm:$0xff] }
 0x3ea   : > { %v1618_v60 = vsub.f32 0.0, %v1614_v22  ;;  %v1619_v49 = vsub.f32 0.0, %v1615_v53  ;;  %v1620_v23 = vsub.f32 0.0, %v1616_v51  ;;  %v1621_v21 = vsub.f32 0.0, %v1617_v6 }
 0x3ec   : > { %v1622_v28 = vmul.f32 1.442695, %v1618_v60  ;;  %v1624_v10 = vmul.f32 1.442695, %v1619_v49  ;;  %v1626_v2 = vmul.f32 1.442695, %v1620_v23 }
 0x3ed   : > { %v1628_v5 = vmul.f32 1.442695, %v1621_v21 }
 0x3ee   : > { %2596 = vpow2.f32 %v1622_v28 }
 0x3ef   : > { %2598 = vpow2.f32 %v1624_v10 }
 0x3f0   : > { %2600 = vpow2.f32 %v1626_v2 }
 0x3f1   : > { %2602 = vpow2.f32 %v1628_v5 }
 0x3fb   : > { %v2597_v57 = vpop.eup %2596 }
 0x3fc   : > { %v2599_v25 = vpop.eup %2598  ;;  %v1630_v55 = vadd.f32 1.0, %v2597_v57 }
 0x3fd   : > { %v2601_v58 = vpop.eup %2600  ;;  %v1631_v38 = vadd.f32 1.0, %v2599_v25 }
 0x3fe   : > { %v2603_v33 = vpop.eup %2602  ;;  %v1632_v29 = vadd.f32 1.0, %v2601_v58  ;;  %2604 = vrcp.f32 %v1630_v55 }
 0x3ff   : > { %v1633_v50 = vadd.f32 1.0, %v2603_v33  ;;  %2606 = vrcp.f32 %v1631_v38 }
 0x400   : > { %2608 = vrcp.f32 %v1632_v29 }
 0x401   : > { %2610 = vrcp.f32 %v1633_v50 }
 0x40b   : > { %v2605_v48 = vpop.eup %2604 }
 0x40c   : > { %v2607_v56 = vpop.eup %2606  ;;  %v1641_v1 = vrot.slane %v2605_v48, %v4087_v9 }
 0x40d   : > { %v2609_v52 = vpop.eup %2608  ;;  %v1645_v63 = vrot.slane %v2607_v56, %v4087_v9 }
 0x40e   : > { %v2611_v18 = vpop.eup %2610  ;;  %v1654_v20 = vmul.f32 %v1641_v1, %v3860_v39  ;;  %v1658_v54 = vmul.f32 %v1641_v1, %v3866_v35  ;;  %v1649_v8 = vrot.slane %v2609_v52, %v4087_v9 }
 0x40f   : > { %v1655_v13 = vmul.f32 %v1645_v63, %v3863_v7  ;;  %v1659_v31 = vmul.f32 %v1645_v63, %v3869_v0  ;;  %v1653_v62 = vrot.slane %v2611_v18, %v4087_v9 }
 0x410   : > { %v1662_v61 = vpack.c.bf16 %v1658_v54, %v1654_v20  ;;  %v1656_v3 = vmul.f32 %v1649_v8, %v3882_v4  ;;  %v1660_v14 = vmul.f32 %v1649_v8, %v3888_v24  ;;  %v2229_v4 = vld [vmem:[%s3994_s10] ss:$0 sm:$0xff] }
 0x411   : > { %v1663_v12 = vpack.c.bf16 %v1659_v31, %v1655_v13  ;;  %v1657_v19 = vmul.f32 %v1653_v62, %v3885_v47  ;;  %v1661_v39 = vmul.f32 %v1653_v62, %v3892_v27 }
 0x412   : > { %v1664_v45 = vpack.c.bf16 %v1660_v14, %v1656_v3 }
 0x413   : > { %1961 = vmatprep.mubr.bf16.mxu0 %v1663_v12  ;;  %v1665_v35 = vpack.c.bf16 %v1661_v39, %v1657_v19 }
 0x414   : > { %1962 = vmatmul.mubr.bf16.vlgmr.msra.gmra.mxu0 %v1662_v61 }
 0x415   : > { %2002 = vmatprep.mubr.bf16.mxu1 %v1665_v35 }
 0x416   : > { %2003 = vmatmul.mubr.bf16.vlgmr.msra.gmra.mxu1 %v1664_v45 }
 0x4d4   : > { %v2285_v7 = vpop.f32.mrf.mxu0 }
 0x4d6   : > { %v2307_v0 = vpop.f32.mrf.mxu1  ;;  %v2286_v24 = vpop.f32.mrf.mxu0 }
 0x4d7   : > { %v2287_v59 = vadd.f32 %v2286_v24, %v2285_v7 }
 0x4d8   : > { %v2308_v47 = vpop.f32.mrf.mxu1  ;;  %v2288_v36 = vpop.f32.mrf.mxu0 }
 0x4d9   : > { %v1964_v27 = vadd.f32 %v2287_v59, %v2229_v4  ;;  %v2309_v44 = vadd.f32 %v2308_v47, %v2307_v0 }
 0x4da   : > { %v2310_v37 = vpop.f32.mrf.mxu1  ;;  %v2289_v9 = vpop.f32.mrf.mxu0 }
 0x4db   : > { %v2005_v11 = vadd.f32 %v2309_v44, %v1964_v27  ;;  %v2290_v46 = vadd.f32 %v2289_v9, %v2288_v36 }
 0x4dc   : > { %v2311_v41 = vpop.f32.mrf.mxu1 }
 0x4dd   : > { %v2011_v26 = vadd.f32 %v2612_v32, %v2005_v11  ;;  %v1967_v34 = vadd.f32 %v2290_v46, %v2229_v4  ;;  %v2312_v17 = vadd.f32 %v2311_v41, %v2310_v37 }
 0x4df   : > { %2013 = vst [vmem:[%s498_s30] sm:$0xff] %v2011_v26  ;;  %v2008_v42 = vadd.f32 %v2312_v17, %v1967_v34 }
 0x4e1   : > { %v2012_v15 = vadd.f32 %v2613_v40, %v2008_v42 }
 0x4e3   : > { %2014 = vst [vmem:[%s498_s30 + $0x8] sm:$0xff] %v2012_v15 }
 0x4e4   : > { %2837 = shalt.err (!%p2834_p12)
}
 0x4e5   : > { %s2838_s15 = scalar_lea.hbm %s3940_s2, 256  ;;  %s2842_s13 = scalar_lea.hbm %s3995_s11, 512 }
 0x4e6   : > { %p2839_p13 = scmp.ne.s32.totalorder %s3940_s2, %s2838_s15  ;;  %p2843_p3 = scmp.lt.s32.totalorder %s3940_s2, %s3995_s11 }
 0x4e7   : > { %p2844_p4 = scmp.lt.s32.totalorder %s2842_s13, %s2838_s15 }
 0x4e8   : > { %p2840_p5 = pnand %p2839_p13, %p4089_p11 }
 0x4e9   : > { %p2845_p8 = por %p2844_p4, %p2843_p3 }
 0x4ea   : > { %p2841_p1 = pneg %p2840_p5 }
 0x4ec   : > { %p2846_p10 = pnand %p2845_p8, %p2841_p1 }
 0x4ee   : > { %2849 = shalt.err (!%p2846_p10)
}
 0x4ef   : > { %s2927_s29 = smov 128   ;;  %s2928_s1 = smov 8  }
 0x4f0   : > { %2343 = dma.vmem_to_hbm [thread:$0]  (%p4089_p11), %s3935_s3, 256, %s3940_s2, %s2016_s6, %s2927_s29, %s2927_s29, %s2928_s1  }
 0x4f1 PF: > { %s2044_s24 = sand.u32 1, %s2892_s17   ;;  %p4090_p0 = scmp.ne.s32.totalorder %s4033_s28, 0 }
 0x4f2   : > { %p4091_p2 = scmp.ge.s32.totalorder %s2904_s20, 2  ;;  %s2045_s23 = scalar_lea.sflag [#allocation4], %s2044_s24 }
 0x4f4   : > { %p2372_p7 = pnand %p4091_p2, %p4090_p0 }
 0x4f6   : > { %p2373_p9 = pneg %p2372_p7 }
 0x4f8   : > { %2887 = dma.done.wait (%p2373_p9), %s2045_s23, 256  }
 0x4f9   : > { %2889 = vsyncadd (%p2373_p9), %s2045_s23, 4294967040  ;;  %p28_p6 = scmp.ge.s32.totalorder %s3095_s26, 4   ;;  %s4092_s17 = smov %s2896_s18 }
 0x4fa   : > { %s4093_s18 = smov %s2900_s19  ;;  %s4094_s19 = smov %s3107_s22 }
 0x4fb   : > { %s4095_s20 = smov %s3095_s26  ;;  %30 = sbr.rel (!%p28_p6) target bundleno = 15 (0xf), region = 137 }
 0x500   :  { %2050 = vsyncpa [#allocation3], 1 }
 0x501   :  { %2052 = vsyncpa [#allocation3 + $0x1], 1 }
 0x502   :  { %2053 = vsyncpa [#allocation6], 1 }
 0x503   :  { %2054 = vsyncpa [#allocation9], 1 }
 0x504   :  { %2055 = vsyncpa [#allocation12], 1 }
 0x505   :  { %2056 = vsyncpa [#allocation15], 1 }
 0x506   :  { %2057 = vsyncpa [#allocation4], 1 }
 0x507   :  { %2059 = vsyncpa [#allocation4 + $0x1], 1 }

</bundles_post_ra>
